<compile_context>
chip_gen: v7x
topology: tpu7x:2x2x1
jax: 0.10.0
libtpu: 0.0.40
codegen_flags: <defaults>
</compile_context>

<pallas_src>
import jax
import jax.numpy as jnp
from jax.experimental import pallas as pl
from jax.experimental.pallas import tpu as pltpu


# ----------------------------- small helpers -------------------------------------


def _cdiv(a, b):
    return (a + b - 1) // b


def _round_up(n, m):
    return _cdiv(n, m) * m


def _sublane_multiple(dtype):
    # Min second-minor tile: 8 for 4-byte dtypes, 16 for bf16, 32 for int8/fp8.
    return max(8, 32 // jnp.dtype(dtype).itemsize)


def _vmem_capacity_bytes():
    try:
        cap = getattr(pltpu.get_tpu_info(), "vmem_capacity_bytes", None)
        if cap:
            return int(cap)
    except Exception:
        pass
    return 64 << 20  # conservative default (v7x per-TensorCore capacity)


def _target_lane_width():
    # v5e MXU is 128 wide -> fold channels up to 128 lanes; v6e/v7x -> 256.
    try:
        kind = jax.devices()[0].device_kind.lower()
    except Exception:
        kind = ""
    if "v5 lite" in kind or "v5e" in kind or "v5lite" in kind:
        return 128
    return 256


def _choose_fold(rows, c, target_width):
    """Fold factor F so that [rows, C] -> [rows/F, C*F] has a lane dim that is a
    multiple of 128 (lane-dense loads/stores, full MXU width).  Needs rows % F == 0."""
    if c % 128 == 0:
        return 1
    best, f = 1, 2
    while c * f <= target_width:
        if (c * f) % 128 == 0 and rows % f == 0:
            best = f
        f += 1
    return best


# --------------------------------- kernels ----------------------------------------


def _invconv_kernel(x_ref, w_ref, o_ref):
    x = x_ref[...]
    w = w_ref[...]
    if x.dtype != w.dtype:  # static check; e.g. bf16 activations vs f32 weight
        x = x.astype(w.dtype)
    o_ref[...] = jnp.dot(
        x, w, preferred_element_type=jnp.float32,
        precision=jax.lax.Precision.HIGHEST,
    ).astype(o_ref.dtype)


def _invconv_masked_kernel(x_ref, w_ref, m_ref, o_ref):
    x = x_ref[...]
    w = w_ref[...]
    if x.dtype != w.dtype:
        x = x.astype(w.dtype)
    z = jnp.dot(x, w, preferred_element_type=jnp.float32,
                precision=jax.lax.Precision.HIGHEST)
    # Expand the per-row padding mask (folded to F columns) to the C*F lanes of z
    # with a short static chain of lane-broadcast selects (pure VPU, no relayout).
    f = m_ref.shape[-1]
    c = o_ref.shape[-1] // f
    lane_group = jax.lax.broadcasted_iota(jnp.int32, z.shape, 1) // c
    m = m_ref[...].astype(z.dtype)
    m_exp = jnp.zeros_like(z)
    for j in range(f):  # F in {1, 2, 4}
        m_exp = jnp.where(lane_group == j, m[:, j:j + 1], m_exp)
    o_ref[...] = (z * m_exp).astype(o_ref.dtype)


# ------------------------------ pallas wrapper ------------------------------------


def invconv_matmul(x2d, weight, row_mask=None, *, block_rows=None):
    """z2d = x2d @ weight, optionally scaled per-row by row_mask (fused).

    x2d: [rows, C] activations.  weight: [C, C], kept in float32.  row_mask: [rows]."""
    rows, c = x2d.shape
    assert weight.shape == (c, c)
    itemsz = jnp.dtype(x2d.dtype).itemsize
    sub = _sublane_multiple(x2d.dtype)

    # Lane-dense channel fold: [rows, C] -> [rows/F, C*F] against kron(I_F, W).
    fold = _choose_fold(rows, c, _target_lane_width())
    cf = c * fold
    rows_f = rows // fold
    xf = x2d.reshape(rows_f, cf)                               # free row-major view
    wf = weight if fold == 1 else jnp.kron(jnp.eye(fold, dtype=weight.dtype), weight)

    # Row-tile: big tiles (multi-MiB per DMA) to amortize the ~0.35us per-step
    # overhead, clamped to the array, >= 2 grid steps so the "parallel" row axis can
    # shard across TensorCores, and shrunk if the VMEM budget would be exceeded.
    if block_rows is None:
        block_rows = max(sub, ((4 << 20) // max(1, cf * itemsz)) // sub * sub)
        if rows_f > 2 * sub:
            block_rows = min(block_rows, _round_up(_cdiv(rows_f, 2), sub))
    block_rows = int(max(sub, min(_round_up(block_rows, sub), _round_up(rows_f, sub))))

    vmem_budget = max(16 << 20, _vmem_capacity_bytes() * 3 // 4)

    def vmem_needed(br):
        need = 2 * 2 * br * cf * itemsz                       # x + out, double-buffered
        need += 2 * cf * cf * jnp.dtype(weight.dtype).itemsize  # resident weight
        if row_mask is not None:
            need += 2 * br * fold * itemsz
        return need

    while vmem_needed(block_rows) > vmem_budget and block_rows > sub:
        block_rows = max(sub, (block_rows // 2) // sub * sub)

    grid = _cdiv(rows_f, block_rows)   # last block may be partial; Pallas masks it
    vmem_limit = int(min(vmem_budget,
                         max(32 << 20, vmem_needed(block_rows) * 5 // 4 + (4 << 20))))

    cost = pl.CostEstimate(
        flops=2 * rows_f * cf * cf,
        transcendentals=0,
        bytes_accessed=2 * rows * c * itemsz + cf * cf * 4
        + (rows * itemsz if row_mask is not None else 0),
    )

    in_specs = [
        pl.BlockSpec((block_rows, cf), lambda i: (i, 0)),   # activation row tile
        # Constant block index -> fetched once and stays VMEM-resident across steps.
        pl.BlockSpec((cf, cf), lambda i: (0, 0)),
    ]
    args = [xf, wf]
    kernel = _invconv_kernel
    if row_mask is not None:
        mf = jnp.asarray(row_mask, x2d.dtype).reshape(rows_f, fold)
        in_specs.append(pl.BlockSpec((block_rows, fold), lambda i: (i, 0)))
        args.append(mf)
        kernel = _invconv_masked_kernel

    out = pl.pallas_call(
        kernel,
        out_shape=jax.ShapeDtypeStruct((rows_f, cf), x2d.dtype),
        grid_spec=pltpu.PrefetchScalarGridSpec(
            num_scalar_prefetch=0,
            grid=(grid,),
            in_specs=in_specs,
            out_specs=pl.BlockSpec((block_rows, cf), lambda i: (i, 0)),
        ),
        compiler_params=pltpu.CompilerParams(
            dimension_semantics=("parallel",),   # rows shard across TensorCores
            vmem_limit_bytes=vmem_limit,
        ),
        cost_estimate=cost,
    )(*args)
    return out.reshape(rows, c)                               # free row-major view


# --------------------------- module-level semantics --------------------------------


def lu_assemble_weight(p, sign_s, l, log_s, u, inverse=False):
    """W = P @ (L @ U), sldj = sum(log_s), exactly as InvertibleConv._get_weight.
    The inverse is built from two triangular solves and P^T (structure-aware)."""
    c = l.shape[0]
    l_mask = jnp.tril(jnp.ones((c, c), jnp.float32), -1)
    eye = jnp.eye(c, dtype=jnp.float32)
    lower = l * l_mask + eye
    upper = u * l_mask.T + jnp.diag(sign_s * jnp.exp(log_s))
    sldj = jnp.sum(log_s)
    if inverse:
        # TODO(synk): torch inverts in float64; x64 is disabled on TPU, so f32
        #             triangular solves (much closer than a generic inverse) are used.
        inv_l = jax.scipy.linalg.solve_triangular(lower, eye, lower=True,
                                                  unit_diagonal=True)
        inv_u = jax.scipy.linalg.solve_triangular(upper, eye, lower=False)
        weight = inv_u @ (inv_l @ p.T)
    else:
        weight = p @ (lower @ upper)
    return weight, sldj


def invertible_conv_forward(x, params, ldj=None, reverse=False, length=None,
                            channel_padding_mask=None, block_rows=None,
                            min_rows_for_pallas=1024):
    """x: [B, S, C].  Returns (z, ldj) matching InvertibleConv.forward."""
    b, s, c = x.shape
    if ldj is None:
        ldj = jnp.zeros((b,), dtype=x.dtype)
    length = jnp.asarray(s if length is None else length, dtype=jnp.float32)

    weight, sldj = lu_assemble_weight(params["p"], params["sign_s"], params["l"],
                                      params["log_s"], params["u"], inverse=reverse)
    sldj = sldj * length
    ldj = (ldj - sldj) if reverse else (ldj + sldj)

    rows = b * s
    # Per-position masks ([B,S] / [B,S,1]) are fused into the kernel: the matmul is
    # linear and the mask is constant over channels, so scaling the output row equals
    # scaling it after the matmul.  Per-channel masks fall back to a wrapper multiply.
    row_mask = None
    post_mask = None
    if channel_padding_mask is not None:
        m = jnp.asarray(channel_padding_mask)
        if m.ndim == 3 and m.shape[-1] == 1:
            row_mask = jnp.broadcast_to(m[..., 0], (b, s)).reshape(rows)
        elif m.ndim == 2:
            row_mask = jnp.broadcast_to(m, (b, s)).reshape(rows)
        else:
            post_mask = m  # TODO(synk): per-channel padding mask is not fused in-kernel.

    x2d = x.reshape(rows, c)
    if rows < min_rows_for_pallas:
        # Tiny inputs: kernel launch / pipeline warm-up dominates; let XLA fuse it.
        z2d = jnp.dot(x2d, weight, preferred_element_type=jnp.float32,
                      precision=jax.lax.Precision.HIGHEST).astype(x.dtype)
        if row_mask is not None:
            z2d = z2d * row_mask[:, None].astype(z2d.dtype)
    else:
        z2d = invconv_matmul(x2d, weight, row_mask=row_mask, block_rows=block_rows)
    z = z2d.reshape(b, s, c)
    if post_mask is not None:
        z = z * post_mask.astype(z.dtype)
    return z, ldj


# ------------------------------------ demo -----------------------------------------


if __name__ == "__main__":
    key = jax.random.PRNGKey(0)
    kx, kw, kx2 = jax.random.split(key, 3)

    C = 64

    # Parameter init mirroring InvertibleConv.__init__ (LU-decomposed path).
    w_rand = jax.random.normal(kw, (C, C), dtype=jnp.float32)
    w_init, _ = jnp.linalg.qr(w_rand)
    p_mat, l_mat, u_mat = jax.scipy.linalg.lu(w_init)   # w_init = P @ L @ U
    s_diag = jnp.diag(u_mat)
    params = {
        "p": p_mat.astype(jnp.float32),
        "sign_s": jnp.sign(s_diag).astype(jnp.float32),
        "l": l_mat.astype(jnp.float32),
        "log_s": jnp.log(jnp.abs(s_diag)).astype(jnp.float32),
        "u": jnp.triu(u_mat, k=1).astype(jnp.float32),
    }
    w_ref, sldj_ref = lu_assemble_weight(params["p"], params["sign_s"], params["l"],
                                         params["log_s"], params["u"])

    # Small shape: exercises fold (C=64 -> 128/256 lanes), grid > 1 and a partial
    # final row block.  min_rows_for_pallas=0 forces the Pallas path for the demo.
    B, S = 3, 100
    x = jax.random.normal(kx, (B, S, C), dtype=jnp.float32)

    z, ldj = invertible_conv_forward(x, params, block_rows=32, min_rows_for_pallas=0)
    z, ldj = jax.block_until_ready(z), jax.block_until_ready(ldj)
    z_ref = jnp.einsum("bsc,cd->bsd", x, w_ref, precision=jax.lax.Precision.HIGHEST)
    ldj_ref = jnp.zeros((B,), jnp.float32) + sldj_ref * S
    assert z.shape == (B, S, C) and ldj.shape == (B,), (z.shape, ldj.shape)
    assert jnp.allclose(z, z_ref, atol=2e-3, rtol=2e-3), "z mismatch vs reference"
    assert jnp.allclose(ldj, ldj_ref, atol=1e-3, rtol=1e-4), "ldj mismatch vs reference"

    # Fused per-position channel_padding_mask.
    pad_mask = jnp.broadcast_to(
        (jnp.arange(S) < 80).astype(jnp.float32)[None, :, None], (B, S, 1))
    zm, _ = invertible_conv_forward(x, params, channel_padding_mask=pad_mask,
                                    block_rows=32, min_rows_for_pallas=0)
    zm = jax.block_until_ready(zm)
    assert jnp.allclose(zm, z_ref * pad_mask, atol=2e-3, rtol=2e-3), "masked z mismatch"

    # Reverse: reconstructs x and cancels ldj.
    x_rec, ldj_rec = invertible_conv_forward(z, params, ldj=ldj, reverse=True,
                                             block_rows=32, min_rows_for_pallas=0)
    x_rec, ldj_rec = jax.block_until_ready(x_rec), jax.block_until_ready(ldj_rec)
    assert jnp.allclose(x_rec, x, atol=2e-3, rtol=2e-3), "reverse reconstruction failed"
    assert jnp.allclose(ldj_rec, 0.0, atol=1e-3), "ldj did not cancel in reverse"

    # Larger shape through the default auto tile/fold/VMEM heuristics.
    B2, S2 = 8, 512
    x2 = jax.random.normal(kx2, (B2, S2, C), dtype=jnp.float32)
    z2, _ = invertible_conv_forward(x2, params)
    z2 = jax.block_until_ready(z2)
    z2_ref = jnp.einsum("bsc,cd->bsd", x2, w_ref, precision=jax.lax.Precision.HIGHEST)
    assert jnp.allclose(z2, z2_ref, atol=2e-3, rtol=2e-3), "large-shape z mismatch"

    print("KERNEL_OK")
</pallas_src>

<mosaic_0001>
module attributes {stable_mosaic.version = 11 : i64} {
  func.func @_invconv_kernel(%arg0: i32, %arg1: memref<32x256xf32, #tpu.memory_space<vmem>>, %arg2: memref<256x256xf32, #tpu.memory_space<vmem>>, %arg3: memref<32x256xf32, #tpu.memory_space<vmem>>) attributes {dimension_semantics = [#tpu.dimension_semantics<parallel>], iteration_bounds = array<i64: 3>, scalar_prefetch = 0 : i64, scratch_operands = 0 : i64, tpu.core_type = #tpu.core_type<tc>, window_params = [{transform_indices = @transform_0, window_bounds = array<i64: 32, 256>}, {pipeline_mode = #tpu.pipeline_mode<synchronous>, transform_indices = @transform_1, window_bounds = array<i64: 256, 256>}, {transform_indices = @transform_2, window_bounds = array<i64: 32, 256>}]} {
    %c0 = arith.constant 0 : index
    %c0_0 = arith.constant 0 : index
    %0 = vector.load %arg1[%c0, %c0_0] : memref<32x256xf32, #tpu.memory_space<vmem>>, vector<32x256xf32>
    %c0_1 = arith.constant 0 : index
    %c0_2 = arith.constant 0 : index
    %1 = vector.load %arg2[%c0_1, %c0_2] : memref<256x256xf32, #tpu.memory_space<vmem>>, vector<256x256xf32>
    %cst = arith.constant dense<0.000000e+00> : vector<32x256xf32>
    %2 = tpu.matmul %0, %1, %cst {dimension_numbers = #tpu.dot_dimension_numbers<[1], [0], [0], [1], [0, 0, 1, 1], [], []>, precision = #tpu.contract_precision<fp32>} : vector<32x256xf32>, vector<256x256xf32>, vector<32x256xf32> -> vector<32x256xf32>
    %c0_3 = arith.constant 0 : index
    %c0_4 = arith.constant 0 : index
    %3 = vector.load %arg3[%c0_3, %c0_4] : memref<32x256xf32, #tpu.memory_space<vmem>>, vector<32x256xf32>
    tpu.vector_store %arg3[%c0_3, %c0_4], %2 {strides = array<i32>} : memref<32x256xf32, #tpu.memory_space<vmem>>, vector<32x256xf32>,
    return
  }
  func.func @transform_0(%arg0: i32) -> (i32, i32) {
    %c0_i32 = arith.constant 0 : i32
    %c0_i32_0 = arith.constant 0 : i32
    return %arg0, %c0_i32 : i32, i32
  }
  func.func @transform_1(%arg0: i32) -> (i32, i32) {
    %c0_i32 = arith.constant 0 : i32
    %c0_i32_0 = arith.constant 0 : i32
    %c0_i32_1 = arith.constant 0 : i32
    return %c0_i32, %c0_i32_0 : i32, i32
  }
  func.func @transform_2(%arg0: i32) -> (i32, i32) {
    %c0_i32 = arith.constant 0 : i32
    %c0_i32_0 = arith.constant 0 : i32
    return %arg0, %c0_i32 : i32, i32
  }
}

</mosaic_0001>

<bundles_post_ra>
// kernel: tpu_custom_call.1
= control target key start
LH: loop header
LB: loop body
LE: loop exit
PB: predicated region body
PF: predicated region fallthrough
CT: control target
= control target key end

     0   :  { %7 = vsyncpa [#allocation3], 0  ;;  %s3599_s0 = inlined_call_operand.hbm [shape: f32[75,256], index: 0, kind: input, shape index: {}]   ;;  %s3600_s1 = inlined_call_operand.hbm [shape: f32[256,256], index: 1, kind: input, shape index: {}]   ;;  %s3601_s2 = inlined_call_operand.hbm [shape: f32[75,256], index: 2, kind: output, shape index: {}]  }
   0x1   :  { %9 = vsyncpa [#allocation3 + $0x1], 0 }
   0x2   :  { %10 = vsyncpa [#allocation6], 0 }
   0x3   :  { %11 = vsyncpa [#allocation4], 0 }
   0x4   :  { %13 = vsyncpa [#allocation4 + $0x1], 0  ;;  %s2518_s9 = smov 0   ;;  %s2520_s10 = smov 0  }
   0x5   :  { %s2522_s11 = smov 0   ;;  %s2524_s12 = smov 0  }
   0x6 LB: > { %s2539_s13 = sadd.s32 4294967295, %s2492_s12   ;;  %s1852_s14 = sadd.s32 4294967294, %s2492_s12   ;;  %s2492_s12 = sphi %s2524_s12, %s4016_s12   ;;  %s2488_s11 = sphi %s2522_s11, %s4015_s11   ;;  %s2484_s10 = sphi %s2520_s10, %s4014_s10   ;;  %s2480_s9 = sphi %s2518_s9, %s4013_s9  }
   0x7   : > { %s2543_s15 = sadd.s32 1, %s2492_s12   ;;  %s26_s16 = sadd.s32 1, %s2488_s11 }
   0x8   : > { %s23_s17 = ssub.s32 %s2492_s12, %s2543_s15  ;;  %p33_p0 = scmp.ne.s32.totalorder %s2488_s11, %s2484_s10 }
   0x9   : > { %p24_p1 = scmp.eq.s32.totalorder %s23_s17, 0  ;;  %p34_p2 = scmp.eq.s32.totalorder %s2492_s12, 0 }
   0xa   : > { %p39_p3 = scmp.ne.s32.totalorder %s2484_s10, %s2480_s9  ;;  %p3602_p4 = scmp.eq.s32.totalorder %s2539_s13, 0 }
   0xb   : > { %s2555_s18 = scalar_select %p24_p1, %s2488_s11, %s26_s16  }
   0xc   : > { %p2557_p5 = por %p34_p2, %p33_p0  ;;  %p2563_p6 = por %p3602_p4, %p39_p3 }
   0xd   : > { %p84_p7 = scmp.eq.s32.totalorder %s2539_s13, 2  ;;  %p90_p8 = scmp.eq.s32.totalorder %s1852_s14, 2 }
   0xe   : > { %s3741_s19 = scalar_select %p2557_p5, 1, 0 }
   0xf   : > { %s3742_s20 = scalar_select %p2563_p6, 1, 0 }
  0x10   : > { %p1853_p9 = scmp.ge.s32.totalorder %s2492_s12, 1  ;;  %p97_p10 = scmp.lt.s32.totalorder %s2492_s12, 4 }
  0x11   : > { %p2570_p11 = por %p84_p7, %p33_p0  ;;  %p2574_p12 = por %p90_p8, %p39_p3 }
  0x12   : > { %p2578_p13 = pnand %p1853_p9, %p97_p10  ;;  %s2494_s24 = smov [#allocation5]  }
  0x13   : > { %s3743_s21 = scalar_select %p2570_p11, 1, 0 }
  0x14   : > { %s3744_s22 = scalar_select %p2574_p12, 1, 0 }
  0x15   : > { %s3745_s23 = scalar_select %p2578_p13, 1, 0 }
  0x16   : > { %p2316_p1 = pneg %p2578_p13  ;;  %s109_s25 = sshll.u32 %s2494_s24, 4  ;;  %s110_s25 = int_to_ptr.vmem [resolvable:$true] %s109_s25 }
  0x17   : > { %s2366_s29 = scalar_lea.hbm %s3600_s1, 8192 }
  0x18   : > { %p2586_p2 = pnand %p2316_p1, %p3602_p4  ;;  %p2367_p0 = scmp.ne.s32.totalorder %s3600_s1, %s2366_s29 }
  0x19   : > { %p2373_p9 = scmp.lt.u32.totalorder %s2366_s29, %s3600_s1 }
  0x1a   : > { %p2368_p3 = pneg %p2586_p2 }
  0x1c   : > { %p2369_p7 = pnand %p2368_p3, %p2367_p0 }
  0x1e   : > { %p2370_p8 = pneg %p2369_p7 }
  0x20   : > { %p2375_p10 = pnand %p2373_p9, %p2370_p8 }
  0x22   : > { %2378 = shalt.err (!%p2375_p10)
}
  0x23   : > { %s2379_s6 = scalar_lea.vmem %s110_s25, 8192  ;;  %p2387_p11 = scmp.lt.s32.totalorder %s110_s25, %s110_s25 }
  0x24   : > { %p2380_p1 = scmp.ne.s32.totalorder %s110_s25, %s2379_s6  ;;  %p2388_p6 = scmp.lt.s32.totalorder %s2379_s6, %s2379_s6 }
  0x26   : > { %p2382_p4 = pnand %p2380_p1, %p2368_p3  ;;  %p2389_p13 = por %p2388_p6, %p2387_p11 }
  0x28   : > { %p2383_p12 = pneg %p2382_p4 }
  0x2a   : > { %p2390_p5 = pnand %p2389_p13, %p2383_p12 }
  0x2c   : > { %2393 = shalt.err (!%p2390_p5)
}
  0x2d   : > { %s2495_s7 = smov 256   ;;  %s2496_s8 = smov 16  }
  0x2e   : > { %2319 = dma.hbm_to_vmem [thread:$0]  (!%p2586_p2), %s3600_s1, 8192, %s110_s25, [#allocation6], %s2495_s7, %s2495_s7, %s2496_s8  }
  0x2f   : > { %p1855_p0 = scmp.ge.s32.totalorder %s2492_s12, 3 }
  0x30   : > { %p3747_p7 = scmp.ne.s32.totalorder (!%p1855_p0), %s3741_s19, 0 }
  0x31   : > { %119 = sbr.rel (%p1855_p0) target bundleno = 91 (0x5b), region = 20 }
  0x38   : > { %122 = sbr.rel (!%p3747_p7) target bundleno = 91 (0x5b), region = 24  ;;  %s123_s17 = sand.u32 (%p3747_p7), 1, %s2488_s11  }
  0x39   : > { %s1857_s24 = sshll.u32 (%p3747_p7), %s2492_s12, 2  ;;  %s1856_s27 = sshll.u32 (%p3747_p7), %s123_s17, 6 }
  0x3a   : > { %s129_s28 = ssub.s32 (%p3747_p7), 10, %s1857_s24  ;;  %s2614_s30 = scalar_lea.sflag (%p3747_p7), [#allocation3], %s123_s17 }
  0x3b   : > { %p130_p4 = scmp.lt.s32.totalorder (%p3747_p7), %s129_s28, 4  ;;  %s127_s25 = scalar_lea.vmem (%p3747_p7), [#allocation2], %s1856_s27 }
  0x3f   : > { %s4018_s28 = smov (!%p130_p4, %s129_s28), 4 }
  0x40   : > { %s2611_s29 = sshll.u32 %s4018_s28, 8 }
  0x41   : > { %s135_s26 = ssub.s32 1024, %s2611_s29 }
  0x42   : > { %136 = vsyncadd %s2614_s30, %s135_s26  ;;  %p1860_p5 = scmp.ne.s32.totalorder %s2611_s29, 0  ;;  %s1882_s19 = sshll.u32 %s2492_s12, 10 }
  0x43   : > { %s2622_s5 = scalar_lea.hbm %s3599_s0, %s1882_s19  ;;  %s142_s6 = sshll.u32 %s127_s25, 4  ;;  %s2624_s6 = int_to_ptr.vmem [resolvable:$true] %s142_s6 }
  0x44   : > { %s2394_s7 = scalar_lea.hbm %s2622_s5, %s2611_s29  ;;  %s2398_s16 = scalar_lea.hbm %s3599_s0, 2560 }
  0x45   : > { %p2395_p6 = scmp.ne.s32.totalorder %s2622_s5, %s2394_s7  ;;  %p2399_p13 = scmp.lt.u32.totalorder %s2622_s5, %s3599_s0 }
  0x46   : > { %p2400_p2 = scmp.lt.u32.totalorder %s2398_s16, %s2394_s7  ;;  %p2402_p8 = scmp.lt.u32.totalorder %s2394_s7, %s2622_s5 }
  0x47   : > { %p2396_p11 = pnand %p2395_p6, %p1860_p5 }
  0x48   : > { %p2401_p3 = por %p2400_p2, %p2399_p13 }
  0x49   : > { %p2397_p12 = pneg %p2396_p11 }
  0x4a   : > { %p2403_p9 = por %p2402_p8, %p2401_p3 }
  0x4c   : > { %p2404_p10 = pnand %p2403_p9, %p2397_p12 }
  0x4e   : > { %2407 = shalt.err (!%p2404_p10)
}
  0x4f   : > { %s2408_s27 = scalar_lea.vmem %s2624_s6, %s2611_s29  ;;  %s2497_s28 = smov [#allocation2]  }
  0x50   : > { %p2409_p1 = scmp.ne.s32.totalorder %s2624_s6, %s2408_s27  ;;  %s2412_s26 = sshll.u32 %s2497_s28, 4  ;;  %s2413_s26 = int_to_ptr.vmem [resolvable:$false] %s2412_s26 }
  0x51   : > { %s2414_s25 = scalar_lea.vmem %s2413_s26, 2048  ;;  %p2415_p4 = scmp.lt.s32.totalorder %s2624_s6, %s2413_s26 }
  0x52   : > { %p2410_p0 = pnand %p2409_p1, %p1860_p5  ;;  %p2416_p6 = scmp.lt.s32.totalorder %s2414_s25, %s2408_s27 }
  0x54   : > { %p2411_p7 = pneg %p2410_p0  ;;  %p2417_p11 = por %p2416_p6, %p2415_p4 }
  0x56   : > { %p2418_p13 = pnand %p2417_p11, %p2411_p7 }
  0x58   : > { %2421 = shalt.err (!%p2418_p13)
}
  0x59   : > { %s2498_s19 = smov 256   ;;  %s2499_s3 = smov 16  }
  0x5a   : > { %148 = dma.hbm_to_vmem [thread:$0]  (%p1860_p5), %s2622_s5, %s2611_s29, %s2624_s6, %s2614_s30, %s2498_s19, %s2498_s19, %s2499_s3  }
  0x5b PF: > { %p3748_p12 = scmp.ne.s32.totalorder %s3745_s23, 0 }
  0x5d   : > { %154 = sbr.rel (%p3748_p12) target bundleno = 564 (0x234), region = 28 }
  0x64   : > { %s2654_s4 = sand.u32 1, %s2484_s10   ;;  %p3749_p2 = scmp.ne.s32.totalorder %s3742_s20, 0 }
  0x65   : > { %s1866_s7 = sshll.u32 %s2654_s4, 6  ;;  %s157_s8 = scalar_lea.sflag [#allocation3], %s2654_s4 }
  0x66   : > { %s2660_s14 = scalar_lea.vmem [#allocation2], %s1866_s7 }
  0x67   : > { %2467 = dma.done.wait (%p3749_p2), %s157_s8, 1024  }
  0x68   : > { %2469 = vsyncadd (%p3749_p2), %s157_s8, 4294966272  ;;  %p3750_p5 = scmp.eq.s32.totalorder %s2539_s13, 0 }
  0x6a   : > { %2471 = dma.done.wait (%p3750_p5), [#allocation6], 8192   ;;  %p3751_p3 = pmov %p3750_p5 }
  0x6b   : > { %v206_v0 = vld [vmem:[#allocation5 + $0x8] sm:$0xff]  ;;  %v208_v1 = vld [vmem:[#allocation5 + $0x18] sm:$0xff]  ;;  %v205_v2 = vld [vmem:[#allocation5] sm:$0xff]  ;;  %s3527_s20 = scalar_lea.vmem [#allocation7], %s1866_s7  ;;  %s1748_s23 = scalar_lea.sflag [#allocation4], %s2654_s4 }
  0x6c   : > { %2473 = vsyncadd (%p3751_p3), [#allocation6], 4294959104  ;;  %v269_v3 = vand.u32 4294901760, %v206_v0  ;;  %v273_v4 = vand.u32 4294901760, %v208_v1  ;;  %v207_v5 = vld [vmem:[#allocation5 + $0x10] sm:$0xff]  ;;  %v271_v6 = vand.u32 4294901760, %v205_v2 }
  0x6d   : > { %v210_v7 = vld [vmem:[#allocation5 + $0x28] sm:$0xff]  ;;  %v212_v8 = vld [vmem:[#allocation5 + $0x38] sm:$0xff]  ;;  %v275_v9 = vand.u32 4294901760, %v207_v5  ;;  %v209_v12 = vld [vmem:[#allocation5 + $0x20] sm:$0xff]  ;;  %p4011_p8 = scmp.ne.s32.totalorder %s3743_s21, 0 }
  0x6e   : > { %v277_v10 = vand.u32 4294901760, %v210_v7  ;;  %v281_v11 = vand.u32 4294901760, %v212_v8  ;;  %v211_v13 = vld [vmem:[#allocation5 + $0x30] sm:$0xff]  ;;  %v214_v14 = vld [vmem:[#allocation5 + $0x48] sm:$0xff]  ;;  %v2670_v15 = vpack.c.bf16 %v273_v4, %v269_v3  ;;  %v216_v16 = vld [vmem:[#allocation5 + $0x58] sm:$0xff]  ;;  %v279_v23 = vand.u32 4294901760, %v209_v12 }
  0x6f   : > { %v213_v17 = vld [vmem:[#allocation5 + $0x40] sm:$0xff]  ;;  %v215_v18 = vld [vmem:[#allocation5 + $0x50] sm:$0xff]  ;;  %v2672_v19 = vpack.c.bf16 %v275_v9, %v271_v6  ;;  %v218_v21 = vld [vmem:[#allocation5 + $0x68] sm:$0xff]  ;;  %v283_v24 = vand.u32 4294901760, %v211_v13  ;;  %v285_v25 = vand.u32 4294901760, %v214_v14  ;;  %v2678_v26 = vsub.f32 %v206_v0, %v269_v3  ;;  %s1870_s29 = sshll.u32 (%p4011_p8), %s2539_s13, 2 }
  0x70   : > { %3752 = vst [vmem:[#allocation11_spill] sm:$0xff] %v2670_v15  ;;  %v2674_v20 = vpack.c.bf16 %v281_v11, %v277_v10  ;;  %v220_v22 = vld [vmem:[#allocation5 + $0x78] sm:$0xff]  ;;  %1887 = vmatprep.subr.bf16.mxu1 %v2670_v15  ;;  %2079 = vmatprep.subr.bf16.mxu0 %v2670_v15  ;;  %v289_v27 = vand.u32 4294901760, %v216_v16  ;;  %v287_v28 = vand.u32 4294901760, %v213_v17  ;;  %v291_v29 = vand.u32 4294901760, %v215_v18  ;;  %v217_v34 = vld [vmem:[#allocation5 + $0x60] sm:$0xff] }
  0x71   : > { %3753 = vst [vmem:[#allocation12_spill] sm:$0xff] %v2672_v19  ;;  %3755 = vst [vmem:[#allocation14_spill] sm:$0xff] %v2678_v26  ;;  %1889 = vmatpush1.bf16.msra.mxu1 %v2672_v19  ;;  %2081 = vmatpush1.bf16.msra.mxu0 %v2672_v19  ;;  %v2682_v30 = vsub.f32 %v208_v1, %v273_v4  ;;  %v2686_v31 = vpack.c.bf16 %v283_v24, %v279_v23  ;;  %v293_v32 = vand.u32 4294901760, %v218_v21  ;;  %v219_v35 = vld [vmem:[#allocation5 + $0x70] sm:$0xff]  ;;  %v222_v40 = vld [vmem:[#allocation5 + $0x88] sm:$0xff]  ;;  %s1756_s30 = ssub.s32 (%p4011_p8), 10, %s1870_s29 }
  0x72   : > { %3754 = vst [vmem:[#allocation13_spill] sm:$0xff] %v2674_v20  ;;  %1891 = vmatprep.subr.bf16.mxu1 %v2674_v20  ;;  %2083 = vmatprep.subr.bf16.mxu0 %v2674_v20  ;;  %v297_v33 = vand.u32 4294901760, %v220_v22  ;;  %v2688_v36 = vsub.f32 %v205_v2, %v271_v6  ;;  %v2690_v37 = vsub.f32 %v207_v5, %v275_v9  ;;  %v224_v41 = vld [vmem:[#allocation5 + $0x98] sm:$0xff]  ;;  %v221_v46 = vld [vmem:[#allocation5 + $0x80] sm:$0xff]  ;;  %v223_v47 = vld [vmem:[#allocation5 + $0x90] sm:$0xff]  ;;  %v295_v50 = vand.u32 4294901760, %v217_v34 }
  0x73   : > { %3756 = vst [vmem:[#allocation15_spill] sm:$0xff] %v2682_v30  ;;  %3757 = vst [vmem:[#allocation16_spill] sm:$0xff] %v2686_v31  ;;  %v2692_v38 = vsub.f32 %v210_v7, %v277_v10  ;;  %v2694_v39 = vpack.c.bf16 %v289_v27, %v285_v25  ;;  %v2696_v42 = vsub.f32 %v212_v8, %v281_v11  ;;  %v299_v51 = vand.u32 4294901760, %v219_v35  ;;  %v226_v52 = vld [vmem:[#allocation5 + $0xa8] sm:$0xff]  ;;  %v228_v57 = vld [vmem:[#allocation5 + $0xb8] sm:$0xff]  ;;  %p1757_p9 = scmp.lt.s32.totalorder (%p4011_p8), %s1756_s30, 4 }
  0x74   : > { %3758 = vst [vmem:[#allocation17_spill] sm:$0xff] %v2688_v36  ;;  %3759 = vst [vmem:[#allocation18_spill] sm:$0xff] %v2690_v37  ;;  %v2698_v43 = vsub.f32 %v209_v12, %v279_v23  ;;  %v2700_v44 = vsub.f32 %v211_v13, %v283_v24  ;;  %v2702_v45 = vsub.f32 %v214_v14, %v285_v25  ;;  %v301_v55 = vand.u32 4294901760, %v222_v40  ;;  %v225_v58 = vld [vmem:[#allocation5 + $0xa0] sm:$0xff]  ;;  %v227_v63 = vld [vmem:[#allocation5 + $0xb0] sm:$0xff] }
  0x75   : > { %3760 = vst [vmem:[#allocation19_spill] sm:$0xff] %v2692_v38  ;;  %3761 = vst [vmem:[#allocation20_spill] sm:$0xff] %v2694_v39  ;;  %1893 = vmatpush1.bf16.msra.mxu1 %v2686_v31  ;;  %2085 = vmatpush1.bf16.msra.mxu0 %v2686_v31  ;;  %v2706_v48 = vsub.f32 %v216_v16, %v289_v27  ;;  %v2708_v49 = vpack.c.bf16 %v291_v29, %v287_v28  ;;  %v305_v56 = vand.u32 4294901760, %v224_v41  ;;  %v230_v0 = vld [vmem:[#allocation5 + $0xc8] sm:$0xff]  ;;  %v232_v1 = vld [vmem:[#allocation5 + $0xd8] sm:$0xff] }
  0x76   : > { %3762 = vst [vmem:[#allocation21_spill] sm:$0xff] %v2696_v42  ;;  %3763 = vst [vmem:[#allocation22_spill] sm:$0xff] %v2698_v43  ;;  %1895 = vmatprep.subr.bf16.mxu1 %v2694_v39  ;;  %2087 = vmatprep.subr.bf16.mxu0 %v2694_v39  ;;  %v2712_v53 = vsub.f32 %v213_v17, %v287_v28  ;;  %v2714_v54 = vpack.c.bf16 %v297_v33, %v293_v32  ;;  %v303_v61 = vand.u32 4294901760, %v221_v46  ;;  %v229_v10 = vld [vmem:[#allocation5 + $0xc0] sm:$0xff]  ;;  %v231_v11 = vld [vmem:[#allocation5 + $0xd0] sm:$0xff] }
  0x77   : > { %3764 = vst [vmem:[#allocation23_spill] sm:$0xff] %v2700_v44  ;;  %3765 = vst [vmem:[#allocation24_spill] sm:$0xff] %v2702_v45  ;;  %v2716_v59 = vsub.f32 %v215_v18, %v291_v29  ;;  %v2718_v60 = vsub.f32 %v218_v21, %v293_v32  ;;  %v307_v62 = vand.u32 4294901760, %v223_v47  ;;  %v2720_v2 = vsub.f32 %v220_v22, %v297_v33  ;;  %v234_v23 = vld [vmem:[#allocation5 + $0xe8] sm:$0xff]  ;;  %v236_v24 = vld [vmem:[#allocation5 + $0xf8] sm:$0xff] }
  0x78   : > { %3766 = vst [vmem:[#allocation25_spill] sm:$0xff] %v2706_v48  ;;  %3767 = vst [vmem:[#allocation26_spill] sm:$0xff] %v2708_v49  ;;  %v2722_v3 = vpack.c.bf16 %v299_v51, %v295_v50  ;;  %v2724_v4 = vsub.f32 %v217_v34, %v295_v50  ;;  %v309_v5 = vand.u32 4294901760, %v226_v52  ;;  %v2728_v6 = vsub.f32 %v219_v35, %v299_v51  ;;  %v233_v32 = vld [vmem:[#allocation5 + $0xe0] sm:$0xff]  ;;  %v235_v33 = vld [vmem:[#allocation5 + $0xf0] sm:$0xff] }
  0x79   : > { %3768 = vst [vmem:[#allocation27_spill] sm:$0xff] %v2712_v53  ;;  %3769 = vst [vmem:[#allocation28_spill] sm:$0xff] %v2714_v54  ;;  %1897 = vmatpush1.bf16.msra.mxu1 %v2708_v49  ;;  %2089 = vmatpush1.bf16.msra.mxu0 %v2708_v49  ;;  %v2730_v7 = vsub.f32 %v222_v40, %v301_v55  ;;  %v313_v8 = vand.u32 4294901760, %v228_v57  ;;  %v311_v9 = vand.u32 4294901760, %v225_v58  ;;  %v315_v13 = vand.u32 4294901760, %v227_v63  ;;  %v246_v31 = vld [vmem:[#allocation5 + $0x148] sm:$0xff] }
  0x7a   : > { %3770 = vst [vmem:[#allocation29_spill] sm:$0xff] %v2716_v59  ;;  %3771 = vst [vmem:[#allocation30_spill] sm:$0xff] %v2722_v3  ;;  %1899 = vmatprep.subr.bf16.mxu1 %v2714_v54  ;;  %2091 = vmatprep.subr.bf16.mxu0 %v2714_v54  ;;  %v2734_v12 = vpack.c.bf16 %v305_v56, %v301_v55  ;;  %v317_v14 = vand.u32 4294901760, %v230_v0  ;;  %v321_v16 = vand.u32 4294901760, %v232_v1  ;;  %v319_v28 = vand.u32 4294901760, %v229_v10  ;;  %v237_v55 = vld [vmem:[#allocation5 + $0x100] sm:$0xff] }
  0x7b   : > { %v2736_v17 = vsub.f32 %v224_v41, %v305_v56  ;;  %v2738_v18 = vpack.c.bf16 %v307_v62, %v303_v61  ;;  %v2740_v21 = vsub.f32 %v221_v46, %v303_v61  ;;  %v2742_v22 = vsub.f32 %v223_v47, %v307_v62  ;;  %v238_v41 = vld [vmem:[#allocation5 + $0x108] sm:$0xff]  ;;  %v240_v46 = vld [vmem:[#allocation5 + $0x118] sm:$0xff]  ;;  %v239_v56 = vld [vmem:[#allocation5 + $0x110] sm:$0xff] }
  0x7c   : > { %3772 = vst [vmem:[#allocation31_spill] sm:$0xff] %v2734_v12  ;;  %v2744_v25 = vpack.c.bf16 %v313_v8, %v309_v5  ;;  %v2746_v27 = vsub.f32 %v226_v52, %v309_v5  ;;  %v323_v29 = vand.u32 4294901760, %v231_v11  ;;  %v2750_v34 = vsub.f32 %v228_v57, %v313_v8  ;;  %v242_v5 = vld [vmem:[#allocation5 + $0x128] sm:$0xff]  ;;  %v244_v8 = vld [vmem:[#allocation5 + $0x138] sm:$0xff]  ;;  %v243_v54 = vld [vmem:[#allocation5 + $0x130] sm:$0xff] }
  0x7d   : > { %3773 = vst [vmem:[#allocation32_spill] sm:$0xff] %v2736_v17  ;;  %3774 = vst [vmem:[#allocation33_spill] sm:$0xff] %v2738_v18  ;;  %1901 = vmatpush1.bf16.msra.mxu1 %v2722_v3  ;;  %2093 = vmatpush1.bf16.msra.mxu0 %v2722_v3  ;;  %v2752_v35 = vpack.c.bf16 %v315_v13, %v311_v9  ;;  %v2754_v40 = vsub.f32 %v225_v58, %v311_v9  ;;  %v325_v51 = vand.u32 4294901760, %v234_v23  ;;  %v248_v20 = vld [vmem:[#allocation5 + $0x158] sm:$0xff]  ;;  %v247_v15 = vld [vmem:[#allocation5 + $0x150] sm:$0xff] }
  0x7e   : > { %3775 = vst [vmem:[#allocation34_spill] sm:$0xff] %v2740_v21  ;;  %3776 = vst [vmem:[#allocation35_spill] sm:$0xff] %v2742_v22  ;;  %1903 = vmatprep.subr.bf16.mxu1 %v2734_v12  ;;  %2095 = vmatprep.subr.bf16.mxu0 %v2734_v12  ;;  %v2758_v47 = vsub.f32 %v227_v63, %v315_v13  ;;  %v2760_v50 = vpack.c.bf16 %v321_v16, %v317_v14  ;;  %v329_v52 = vand.u32 4294901760, %v236_v24  ;;  %v241_v12 = vld [vmem:[#allocation5 + $0x120] sm:$0xff] }
  0x7f   : > { %3777 = vst [vmem:[#allocation36_spill] sm:$0xff] %v2744_v25  ;;  %3778 = vst [vmem:[#allocation37_spill] sm:$0xff] %v2746_v27  ;;  %v2762_v57 = vsub.f32 %v230_v0, %v317_v14  ;;  %v2764_v61 = vsub.f32 %v232_v1, %v321_v16  ;;  %v327_v58 = vand.u32 4294901760, %v233_v32  ;;  %v331_v62 = vand.u32 4294901760, %v235_v33 }
  0x80   : > { %3779 = vst [vmem:[#allocation38_spill] sm:$0xff] %v2750_v34  ;;  %3780 = vst [vmem:[#allocation39_spill] sm:$0xff] %v2752_v35  ;;  %v2766_v9 = vpack.c.bf16 %v323_v29, %v319_v28  ;;  %v2768_v3 = vsub.f32 %v229_v10, %v319_v28  ;;  %v333_v63 = vand.u32 4294901760, %v238_v41  ;;  %v337_v13 = vand.u32 4294901760, %v240_v46 }
  0x81   : > { %3781 = vst [vmem:[#allocation40_spill] sm:$0xff] %v2754_v40  ;;  %3782 = vst [vmem:[#allocation41_spill] sm:$0xff] %v2758_v47  ;;  %1905 = vmatpush1.bf16.msra.mxu1 %v2738_v18  ;;  %2097 = vmatpush1.bf16.msra.mxu0 %v2738_v18  ;;  %v2772_v0 = vsub.f32 %v231_v11, %v323_v29  ;;  %v2774_v1 = vsub.f32 %v234_v23, %v325_v51  ;;  %v335_v14 = vand.u32 4294901760, %v237_v55  ;;  %v245_v18 = vld [vmem:[#allocation5 + $0x140] sm:$0xff] }
  0x82   : > { %3783 = vst [vmem:[#allocation42_spill] sm:$0xff] %v2760_v50  ;;  %3784 = vst [vmem:[#allocation43_spill] sm:$0xff] %v2762_v57  ;;  %v339_v16 = vand.u32 4294901760, %v239_v56  ;;  %1907 = vmatprep.subr.bf16.mxu1 %v2744_v25  ;;  %2099 = vmatprep.subr.bf16.mxu0 %v2744_v25  ;;  %v2778_v10 = vpack.c.bf16 %v329_v52, %v325_v51  ;;  %v2780_v28 = vsub.f32 %v236_v24, %v329_v52  ;;  %v264_v57 = vld [vmem:[#allocation5 + $0x1d8] sm:$0xff] }
  0x83   : > { %3785 = vst [vmem:[#allocation44_spill] sm:$0xff] %v2764_v61  ;;  %3786 = vst [vmem:[#allocation45_spill] sm:$0xff] %v2766_v9  ;;  %v341_v49 = vand.u32 4294901760, %v242_v5  ;;  %v345_v39 = vand.u32 4294901760, %v244_v8  ;;  %v2782_v19 = vpack.c.bf16 %v331_v62, %v327_v58  ;;  %v2784_v11 = vsub.f32 %v233_v32, %v327_v58  ;;  %v262_v61 = vld [vmem:[#allocation5 + $0x1c8] sm:$0xff] }
  0x84   : > { %3787 = vst [vmem:[#allocation46_spill] sm:$0xff] %v2768_v3  ;;  %3788 = vst [vmem:[#allocation47_spill] sm:$0xff] %v2772_v0  ;;  %v343_v23 = vand.u32 4294901760, %v241_v12  ;;  %v347_v29 = vand.u32 4294901760, %v243_v54  ;;  %v2788_v0 = vpack.c.bf16 %v337_v13, %v333_v63  ;;  %v2790_v51 = vsub.f32 %v238_v41, %v333_v63  ;;  %v249_v63 = vld [vmem:[#allocation5 + $0x160] sm:$0xff]  ;;  %v255_v3 = vld [vmem:[#allocation5 + $0x190] sm:$0xff] }
  0x85   : > { %3789 = vst [vmem:[#allocation48_spill] sm:$0xff] %v2774_v1  ;;  %3790 = vst [vmem:[#allocation49_spill] sm:$0xff] %v2778_v10  ;;  %v2786_v1 = vsub.f32 %v235_v33, %v331_v62  ;;  %v2792_v24 = vsub.f32 %v240_v46, %v337_v13  ;;  %1909 = vmatpush1.bf16.msra.mxu1 %v2752_v35  ;;  %2101 = vmatpush1.bf16.msra.mxu0 %v2752_v35  ;;  %v349_v58 = vand.u32 4294901760, %v246_v31  ;;  %v251_v13 = vld [vmem:[#allocation5 + $0x170] sm:$0xff] }
  0x86   : > { %3791 = vst [vmem:[#allocation50_spill] sm:$0xff] %v2780_v28  ;;  %3792 = vst [vmem:[#allocation51_spill] sm:$0xff] %v2782_v19  ;;  %v2796_v52 = vpack.c.bf16 %v339_v16, %v335_v14  ;;  %v2798_v32 = vsub.f32 %v237_v55, %v335_v14  ;;  %v353_v25 = vand.u32 4294901760, %v248_v20  ;;  %v252_v28 = vld [vmem:[#allocation5 + $0x178] sm:$0xff]  ;;  %1911 = vmatprep.subr.bf16.mxu1 %v2760_v50  ;;  %2103 = vmatprep.subr.bf16.mxu0 %v2760_v50 }
  0x87   : > { %3793 = vst [vmem:[#allocation52_spill] sm:$0xff] %v2784_v11  ;;  %3794 = vst [vmem:[#allocation53_spill] sm:$0xff] %v2786_v1  ;;  %v250_v11 = vld [vmem:[#allocation5 + $0x168] sm:$0xff]  ;;  %v2802_v33 = vsub.f32 %v239_v56, %v339_v16  ;;  %v2804_v41 = vpack.c.bf16 %v345_v39, %v341_v49  ;;  %v351_v46 = vand.u32 4294901760, %v245_v18  ;;  %v355_v62 = vand.u32 4294901760, %v247_v15 }
  0x88   : > { %3795 = vst [vmem:[#allocation54_spill] sm:$0xff] %v2788_v0  ;;  %3796 = vst [vmem:[#allocation55_spill] sm:$0xff] %v2790_v51  ;;  %v2806_v35 = vsub.f32 %v242_v5, %v341_v49  ;;  %v2808_v55 = vsub.f32 %v244_v8, %v345_v39  ;;  %v2810_v14 = vpack.c.bf16 %v347_v29, %v343_v23  ;;  %v256_v51 = vld [vmem:[#allocation5 + $0x198] sm:$0xff]  ;;  %v357_v16 = vand.u32 4294901760, %v250_v11  ;;  %v258_v8 = vld [vmem:[#allocation5 + $0x1a8] sm:$0xff] }
  0x89   : > { %3797 = vst [vmem:[#allocation56_spill] sm:$0xff] %v2792_v24  ;;  %3798 = vst [vmem:[#allocation57_spill] sm:$0xff] %v2796_v52  ;;  %v254_v24 = vld [vmem:[#allocation5 + $0x188] sm:$0xff]  ;;  %v2814_v1 = vsub.f32 %v243_v54, %v347_v29  ;;  %v2816_v56 = vsub.f32 %v246_v31, %v349_v58  ;;  %v361_v50 = vand.u32 4294901760, %v252_v28  ;;  %1913 = vmatpush1.bf16.msra.mxu1 %v2766_v9  ;;  %2105 = vmatpush1.bf16.msra.mxu0 %v2766_v9  ;;  %v257_v9 = vld [vmem:[#allocation5 + $0x1a0] sm:$0xff] }
  0x8a   : > { %3799 = vst [vmem:[#allocation58_spill] sm:$0xff] %v2798_v32  ;;  %3800 = vst [vmem:[#allocation59_spill] sm:$0xff] %v2802_v33  ;;  %v2812_v32 = vsub.f32 %v241_v12, %v343_v23  ;;  %v253_v33 = vld [vmem:[#allocation5 + $0x180] sm:$0xff]  ;;  %v2820_v39 = vpack.c.bf16 %v353_v25, %v349_v58  ;;  %v2822_v49 = vsub.f32 %v248_v20, %v353_v25  ;;  %v359_v12 = vand.u32 4294901760, %v249_v63  ;;  %v260_v23 = vld [vmem:[#allocation5 + $0x1b8] sm:$0xff] }
  0x8b   : > { %3801 = vst [vmem:[#allocation60_spill] sm:$0xff] %v2804_v41  ;;  %3802 = vst [vmem:[#allocation61_spill] sm:$0xff] %v2806_v35  ;;  %v363_v5 = vand.u32 4294901760, %v251_v13  ;;  %1915 = vmatprep.subr.bf16.mxu1 %v2778_v10  ;;  %2107 = vmatprep.subr.bf16.mxu0 %v2778_v10  ;;  %v2826_v31 = vpack.c.bf16 %v355_v62, %v351_v46  ;;  %v2828_v54 = vsub.f32 %v245_v18, %v351_v46 }
  0x8c   : > { %3803 = vst [vmem:[#allocation62_spill] sm:$0xff] %v2808_v55  ;;  %3804 = vst [vmem:[#allocation63_spill] sm:$0xff] %v2810_v14  ;;  %v365_v29 = vand.u32 4294901760, %v254_v24  ;;  %v2832_v58 = vsub.f32 %v250_v11, %v357_v16  ;;  %v367_v20 = vand.u32 4294901760, %v253_v33  ;;  %v371_v25 = vand.u32 4294901760, %v255_v3 }
  0x8d   : > { %3805 = vst [vmem:[#allocation64_spill] sm:$0xff] %v2812_v32  ;;  %3806 = vst [vmem:[#allocation65_spill] sm:$0xff] %v2814_v1  ;;  %v2830_v1 = vsub.f32 %v247_v15, %v355_v62  ;;  %v2834_v32 = vpack.c.bf16 %v361_v50, %v357_v16  ;;  %v2836_v55 = vsub.f32 %v252_v28, %v361_v50  ;;  %v373_v35 = vand.u32 4294901760, %v258_v8  ;;  %v261_v16 = vld [vmem:[#allocation5 + $0x1c0] sm:$0xff] }
  0x8e   : > { %3807 = vst [vmem:[#allocation66_spill] sm:$0xff] %v2816_v56  ;;  %3808 = vst [vmem:[#allocation67_spill] sm:$0xff] %v2820_v39  ;;  %v369_v56 = vand.u32 4294901760, %v256_v51  ;;  %v377_v10 = vand.u32 4294901760, %v260_v23  ;;  %1917 = vmatpush1.bf16.msra.mxu1 %v2782_v19  ;;  %2109 = vmatpush1.bf16.msra.mxu0 %v2782_v19  ;;  %v2840_v15 = vpack.c.bf16 %v363_v5, %v359_v12  ;;  %v375_v46 = vand.u32 4294901760, %v257_v9 }
  0x8f   : > { %3809 = vst [vmem:[#allocation68_spill] sm:$0xff] %v2822_v49  ;;  %3810 = vst [vmem:[#allocation69_spill] sm:$0xff] %v2826_v31  ;;  %v259_v49 = vld [vmem:[#allocation5 + $0x1b0] sm:$0xff]  ;;  %v2842_v18 = vsub.f32 %v249_v63, %v359_v12  ;;  %v2844_v11 = vsub.f32 %v251_v13, %v363_v5  ;;  %1919 = vmatprep.subr.bf16.mxu1 %v2788_v0  ;;  %2111 = vmatprep.subr.bf16.mxu0 %v2788_v0  ;;  %v381_v63 = vand.u32 4294901760, %v262_v61 }
  0x90   : > { %3811 = vst [vmem:[#allocation70_spill] sm:$0xff] %v2828_v54  ;;  %3812 = vst [vmem:[#allocation71_spill] sm:$0xff] %v2830_v1  ;;  %v2848_v50 = vpack.c.bf16 %v369_v56, %v365_v29  ;;  %v2850_v28 = vsub.f32 %v254_v24, %v365_v29  ;;  %v379_v62 = vand.u32 4294901760, %v259_v49  ;;  %v2852_v19 = vsub.f32 %v256_v51, %v369_v56  ;;  %v266_v24 = vld [vmem:[#allocation5 + $0x1e8] sm:$0xff] }
  0x91   : > { %3813 = vst [vmem:[#allocation72_spill] sm:$0xff] %v2832_v58  ;;  %3814 = vst [vmem:[#allocation73_spill] sm:$0xff] %v2834_v32  ;;  %v2854_v58 = vpack.c.bf16 %v371_v25, %v367_v20  ;;  %v385_v13 = vand.u32 4294901760, %v264_v57  ;;  %v2856_v12 = vsub.f32 %v253_v33, %v367_v20  ;;  %v2858_v5 = vsub.f32 %v255_v3, %v371_v25  ;;  %v198_v29 = vld [vmem:[%s2660_s14 + $0x8] sm:$0xff]  ;;  %v268_v33 = vld [vmem:[#allocation5 + $0x1f8] sm:$0xff] }
  0x92   : > { %3815 = vst [vmem:[#allocation74_spill] sm:$0xff] %v2836_v55  ;;  %3816 = vst [vmem:[#allocation75_spill] sm:$0xff] %v2840_v15  ;;  %v263_v55 = vld [vmem:[#allocation5 + $0x1d0] sm:$0xff]  ;;  %v2860_v0 = vpack.c.bf16 %v377_v10, %v373_v35  ;;  %1921 = vmatpush1.bf16.msra.mxu1 %v2796_v52  ;;  %2113 = vmatpush1.bf16.msra.mxu0 %v2796_v52  ;;  %v2867_v51 = vsub.f32 %v260_v23, %v377_v10  ;;  %v197_v20 = vld [vmem:[%s2660_s14] sm:$0xff] }
  0x93   : > { %3817 = vst [vmem:[#allocation76_spill] sm:$0xff] %v2842_v18  ;;  %3818 = vst [vmem:[#allocation77_spill] sm:$0xff] %v2844_v11  ;;  %v2862_v11 = vsub.f32 %v258_v8, %v373_v35  ;;  %v2869_v56 = vsub.f32 %v257_v9, %v375_v46  ;;  %1923 = vmatprep.subr.bf16.mxu1 %v2804_v41  ;;  %2115 = vmatprep.subr.bf16.mxu0 %v2804_v41  ;;  %v389_v9 = vand.u32 4294901760, %v266_v24  ;;  %v265_v23 = vld [vmem:[#allocation5 + $0x1e0] sm:$0xff]  ;;  %v267_v52 = vld [vmem:[#allocation5 + $0x1f0] sm:$0xff] }
  0x94   : > { %3819 = vst [vmem:[#allocation78_spill] sm:$0xff] %v2848_v50  ;;  %3820 = vst [vmem:[#allocation79_spill] sm:$0xff] %v2850_v28  ;;  %v387_v28 = vand.u32 4294901760, %v263_v55  ;;  %v2874_v3 = vpack.c.bf16 %v379_v62, %v375_v46  ;;  %v2876_v35 = vsub.f32 %v259_v49, %v379_v62  ;;  %v2878_v8 = vsub.f32 %v262_v61, %v381_v63 }
  0x95   : > { %3821 = vst [vmem:[#allocation80_spill] sm:$0xff] %v2852_v19  ;;  %3822 = vst [vmem:[#allocation81_spill] sm:$0xff] %v2854_v58  ;;  %v383_v19 = vand.u32 4294901760, %v261_v16  ;;  %v2880_v25 = vpack.c.bf16 %v385_v13, %v381_v63  ;;  %v2882_v10 = vsub.f32 %v264_v57, %v385_v13  ;;  %v476_v41 = vand.u32 4294901760, %v2682_v30 }
  0x96   : > { %3823 = vst [vmem:[#allocation82_spill] sm:$0xff] %v2856_v12  ;;  %3824 = vst [vmem:[#allocation83_spill] sm:$0xff] %v2860_v0  ;;  %v2888_v46 = vand.u32 4294901760, %v197_v20  ;;  %1925 = vmatpush1.bf16.msra.mxu1 %v2810_v14  ;;  %2117 = vmatpush1.bf16.msra.mxu0 %v2810_v14  ;;  %v470_v62 = vand.u32 4294901760, %v2688_v36  ;;  %v2902_v63 = vsub.f32 %v263_v55, %v387_v28  ;;  %v391_v13 = vand.u32 4294901760, %v265_v23 }
  0x97   : > { %3825 = vst [vmem:[#allocation84_spill] sm:$0xff] %v2862_v11  ;;  %3826 = vst [vmem:[#allocation85_spill] sm:$0xff] %v2867_v51  ;;  %v393_v51 = vand.u32 4294901760, %v268_v33  ;;  %v464_v11 = vand.u32 4294901760, %v2678_v26  ;;  %v2892_v61 = vpack.c.bf16 %v387_v28, %v383_v19  ;;  %v2894_v57 = vsub.f32 %v261_v16, %v383_v19  ;;  %1927 = vmatprep.subr.bf16.mxu1 %v2820_v39 }
  0x98   : > { %3827 = vst [vmem:[#allocation86_spill] sm:$0xff] %v2869_v56  ;;  %3828 = vst [vmem:[#allocation87_spill] sm:$0xff] %v2874_v3  ;;  %v2884_v56 = vand.u32 4294901760, %v198_v29  ;;  %2119 = vmatprep.subr.bf16.mxu0 %v2820_v39  ;;  %v2905_v14 = vsub.f32 %v266_v24, %v389_v9  ;;  %v471_v55 = vsub.f32 %v2688_v36, %v470_v62  ;;  %v488_v28 = vand.u32 4294901760, %v2692_v38 }
  0x99   : > { %3829 = vst [vmem:[#allocation88_spill] sm:$0xff] %v2878_v8  ;;  %3830 = vst [vmem:[#allocation89_spill] sm:$0xff] %v2880_v25  ;;  %v482_v8 = vand.u32 4294901760, %v2690_v37  ;;  %v465_v16 = vsub.f32 %v2678_v26, %v464_v11  ;;  %v2919_v24 = vsub.f32 %v268_v33, %v393_v51  ;;  %v494_v36 = vand.u32 4294901760, %v2698_v43 }
  0x9a   : > { %3831 = vst [vmem:[#allocation90_spill] sm:$0xff] %v2882_v10  ;;  %3832 = vst [vmem:[#allocation91_spill] sm:$0xff] %v2884_v56  ;;  %v2897_v49 = vsub.f32 %v198_v29, %v2884_v56  ;;  %v395_v10 = vand.u32 4294901760, %v267_v52  ;;  %v477_v29 = vsub.f32 %v2682_v30, %v476_v41  ;;  %v2910_v56 = vpack.c.bf16 %v393_v51, %v389_v9 }
  0x9b   : > { %3833 = vst [vmem:[#allocation92_spill] sm:$0xff] %v2888_v46  ;;  %3834 = vst [vmem:[#allocation93_spill] sm:$0xff] %v2892_v61  ;;  %1929 = vmatpush1.bf16.msra.mxu1 %v2826_v31  ;;  %2121 = vmatpush1.bf16.msra.mxu0 %v2826_v31  ;;  %v483_v26 = vsub.f32 %v2690_v37, %v482_v8  ;;  %v2927_v9 = vsub.f32 %v265_v23, %v391_v13  ;;  %v466_v31 = vand.u32 4294901760, %v465_v16 }
  0x9c   : > { %3835 = vst [vmem:[#allocation94_spill] sm:$0xff] %v2894_v57  ;;  %3836 = vst [vmem:[#allocation95_spill] sm:$0xff] %v2897_v49  ;;  %v399_v19 = vand.u32 4294901760, %v2897_v49  ;;  %v2913_v57 = vsub.f32 %v197_v20, %v2888_v46  ;;  %1931 = vmatprep.subr.bf16.mxu1 %v2834_v32  ;;  %2123 = vmatprep.subr.bf16.mxu0 %v2834_v32  ;;  %v2925_v20 = vpack.c.bf16 %v395_v10, %v391_v13 }
  0x9d   : > { %3837 = vst [vmem:[#allocation96_spill] sm:$0xff] %v2910_v56  ;;  %3839 = vst [vmem:[#allocation98_spill] sm:$0xff] %v2919_v24  ;;  %v500_v46 = vand.u32 4294901760, %v2696_v42  ;;  %v478_v51 = vand.u32 4294901760, %v477_v29  ;;  %v506_v33 = vand.u32 4294901760, %v2700_v44  ;;  %v472_v24 = vand.u32 4294901760, %v471_v55 }
  0x9e   : > { %3838 = vst [vmem:[#allocation97_spill] sm:$0xff] %v2913_v57  ;;  %v400_v39 = vsub.f32 %v2897_v49, %v399_v19  ;;  %3840 = vst [vmem:[#allocation99_spill] sm:$0xff] %v2925_v20  ;;  %1243 = vmatprep.mubr.f32.mxu0 %v399_v19  ;;  %v2932_v49 = vsub.f32 %v267_v52, %v395_v10  ;;  %v489_v32 = vsub.f32 %v2692_v38, %v488_v28 }
  0x9f   : > { %1933 = vmatpush1.bf16.msra.mxu1 %v2840_v15  ;;  %2125 = vmatpush1.bf16.msra.mxu0 %v2840_v15  ;;  %v484_v23 = vand.u32 4294901760, %v483_v26  ;;  %v501_v13 = vsub.f32 %v2696_v42, %v500_v46  ;;  %v512_v19 = vand.u32 4294901760, %v2702_v45  ;;  %v2943_v52 = vpack.c.bf16 %v476_v41, %v464_v11 }
  0xa0   : > { %v401_v30 = vand.u32 4294901760, %v400_v39  ;;  %v495_v39 = vsub.f32 %v2698_v43, %v494_v36  ;;  %1935 = vmatprep.subr.bf16.mxu1 %v2848_v50  ;;  %2127 = vmatprep.subr.bf16.mxu0 %v2848_v50  ;;  %v507_v10 = vsub.f32 %v2700_v44, %v506_v33  ;;  %v524_v16 = vand.u32 4294901760, %v2706_v48 }
  0xa1   : > { %v518_v29 = vand.u32 4294901760, %v2712_v53  ;;  %v2948_v26 = vpack.c.bf16 %v478_v51, %v466_v31  ;;  %v2950_v55 = vpack.c.bf16 %v482_v8, %v470_v62  ;;  %v513_v37 = vsub.f32 %v2702_v45, %v512_v19 }
  0xa2   : > { %402 = vmatprep.mubr.f32.mxu1 %v401_v30  ;;  %v530_v15 = vand.u32 4294901760, %v2716_v59  ;;  %v3841_v43 = vand.u32 4294901760, %v2913_v57  ;;  %v490_v11 = vand.u32 4294901760, %v489_v32  ;;  %v525_v50 = vsub.f32 %v2706_v48, %v524_v16 }
  0xa3   : > { %v536_v44 = vand.u32 4294901760, %v2718_v60  ;;  %1937 = vmatpush1.bf16.msra.mxu1 %v2854_v58  ;;  %2129 = vmatpush1.bf16.msra.mxu0 %v2854_v58  ;;  %v2963_v30 = vpack.c.bf16 %v484_v23, %v472_v24  ;;  %v502_v31 = vand.u32 4294901760, %v501_v13  ;;  %v2965_v8 = vpack.c.bf16 %v500_v46, %v488_v28 }
  0xa4   : > { %v2957_v41 = vsub.f32 %v2913_v57, %v3841_v43  ;;  %v496_v62 = vand.u32 4294901760, %v495_v39  ;;  %1939 = vmatprep.subr.bf16.mxu1 %v2860_v0  ;;  %2131 = vmatprep.subr.bf16.mxu0 %v2860_v0  ;;  %v508_v43 = vand.u32 4294901760, %v507_v10  ;;  %v519_v32 = vsub.f32 %v2712_v53, %v518_v29 }
  0xa5   : > { %v531_v51 = vsub.f32 %v2716_v59, %v530_v15  ;;  %v548_v48 = vand.u32 4294901760, %v2720_v2  ;;  %v514_v45 = vand.u32 4294901760, %v513_v37  ;;  %v526_v42 = vand.u32 4294901760, %v525_v50 }
  0xa6   : > { %v542_v24 = vand.u32 4294901760, %v2724_v4  ;;  %v554_v23 = vand.u32 4294901760, %v2728_v6  ;;  %v407_v46 = vand.u32 4294901760, %v2957_v41  ;;  %v2975_v28 = vpack.c.bf16 %v506_v33, %v494_v36 }
  0xa7   : > { %v537_v13 = vsub.f32 %v2718_v60, %v536_v44  ;;  %v549_v39 = vsub.f32 %v2720_v2, %v548_v48  ;;  %1941 = vmatpush1.bf16.msra.mxu1 %v2874_v3  ;;  %2133 = vmatpush1.bf16.msra.mxu0 %v2874_v3  ;;  %v2981_v10 = vpack.c.bf16 %v502_v31, %v490_v11  ;;  %v560_v50 = vand.u32 4294901760, %v2730_v7 }
  0xa8   : > { %v2983_v37 = vpack.c.bf16 %v524_v16, %v512_v19  ;;  %v572_v0 = vand.u32 4294901760, %v2736_v17  ;;  %1943 = vmatprep.subr.bf16.mxu1 %v2880_v25  ;;  %2135 = vmatprep.subr.bf16.mxu0 %v2880_v25  ;;  %v520_v36 = vand.u32 4294901760, %v519_v32  ;;  %v532_v33 = vand.u32 4294901760, %v531_v51 }
  0xa9   : > { %v543_v41 = vsub.f32 %v2724_v4, %v542_v24  ;;  %v555_v58 = vsub.f32 %v2728_v6, %v554_v23  ;;  %v2991_v59 = vpack.c.bf16 %v508_v43, %v496_v62  ;;  %v2993_v11 = vpack.c.bf16 %v526_v42, %v514_v45 }
  0xaa   : > { %v2995_v19 = vpack.c.bf16 %v530_v15, %v518_v29  ;;  %v566_v16 = vand.u32 4294901760, %v2740_v21  ;;  %v538_v31 = vand.u32 4294901760, %v537_v13  ;;  %v550_v3 = vand.u32 4294901760, %v549_v39 }
  0xab   : > { %v2998_v53 = vpack.c.bf16 %v548_v48, %v536_v44  ;;  %v578_v25 = vand.u32 4294901760, %v2742_v22  ;;  %1945 = vmatpush1.bf16.msra.mxu1 %v2892_v61  ;;  %2137 = vmatpush1.bf16.msra.mxu0 %v2892_v61  ;;  %v561_v32 = vsub.f32 %v2730_v7, %v560_v50  ;;  %v573_v62 = vsub.f32 %v2736_v17, %v572_v0 }
  0xac   : > { %v584_v42 = vand.u32 4294901760, %v2746_v27  ;;  %v596_v45 = vand.u32 4294901760, %v2750_v34  ;;  %1947 = vmatprep.subr.bf16.mxu1 %v2910_v56  ;;  %2139 = vmatprep.subr.bf16.mxu0 %v2910_v56  ;;  %v3009_v44 = vpack.c.bf16 %v532_v33, %v520_v36  ;;  %v544_v48 = vand.u32 4294901760, %v543_v41  ;;  %v3842_v36 = vld [vmem:[#allocation43_spill] sm:$0xff] }
  0xad   : > { %v556_v15 = vand.u32 4294901760, %v555_v58  ;;  %v590_v29 = vand.u32 4294901760, %v2754_v40  ;;  %v3012_v43 = vpack.c.bf16 %v554_v23, %v542_v24  ;;  %v3014_v51 = vpack.c.bf16 %v572_v0, %v560_v50  ;;  %v3843_v23 = vld [vmem:[#allocation44_spill] sm:$0xff] }
  0xae   : > { %v567_v13 = vsub.f32 %v2740_v21, %v566_v16  ;;  %v579_v39 = vsub.f32 %v2742_v22, %v578_v25  ;;  %v585_v61 = vsub.f32 %v2746_v27, %v584_v42  ;;  %v597_v38 = vsub.f32 %v2750_v34, %v596_v45  ;;  %v3844_v22 = vld [vmem:[#allocation46_spill] sm:$0xff] }
  0xaf   : > { %v602_v56 = vand.u32 4294901760, %v2758_v47  ;;  %v608_v33 = vand.u32 4294901760, %v3842_v36  ;;  %1949 = vmatpush1.bf16.msra.mxu1 %v2925_v20  ;;  %2141 = vmatpush1.bf16.msra.mxu0 %v2925_v20  ;;  %v3024_v58 = vpack.c.bf16 %v550_v3, %v538_v31  ;;  %v562_v0 = vand.u32 4294901760, %v561_v32 }
  0xb0   : > { %v574_v24 = vand.u32 4294901760, %v573_v62  ;;  %v620_v50 = vand.u32 4294901760, %v3843_v23  ;;  %1951 = vmatprep.subr.bf16.mxu1 %v2948_v26  ;;  %2143 = vmatprep.subr.bf16.mxu0 %v2943_v52  ;;  %v3029_v41 = vpack.c.bf16 %v556_v15, %v544_v48  ;;  %v591_v34 = vsub.f32 %v2754_v40, %v590_v29  ;;  %v3846_v48 = vld [vmem:[#allocation47_spill] sm:$0xff] }
  0xb1   : > { %v603_v27 = vsub.f32 %v2758_v47, %v602_v56  ;;  %v614_v21 = vand.u32 4294901760, %v3844_v22  ;;  %v568_v17 = vand.u32 4294901760, %v567_v13  ;;  %v580_v20 = vand.u32 4294901760, %v579_v39  ;;  %v3851_v40 = vld [vmem:[#allocation55_spill] sm:$0xff] }
  0xb2   : > { %v609_v3 = vsub.f32 %v3842_v36, %v608_v33  ;;  %v621_v31 = vsub.f32 %v3843_v23, %v620_v50  ;;  %408 = vmatmul.mubr.f32.vlgmr.msra.gmra.mrb[0].mxu1 %v407_v46  ;;  %v3845_v32 = vand.u32 4294901760, %v2913_v57  ;;  %v3038_v26 = vpack.c.bf16 %v578_v25, %v566_v16  ;;  %v3847_v36 = vld [vmem:[#allocation48_spill] sm:$0xff]  ;;  %v3848_v46 = vld [vmem:[#allocation50_spill] sm:$0xff]  ;;  %v3850_v57 = vld [vmem:[#allocation53_spill] sm:$0xff] }
  0xb3   : > { %v586_v52 = vand.u32 4294901760, %v585_v61  ;;  %v598_v62 = vand.u32 4294901760, %v597_v38  ;;  %v626_v15 = vand.u32 4294901760, %v3846_v48  ;;  %1953 = vmatpush1.bf16.msra.mxu1 %v2963_v30  ;;  %v3043_v13 = vpack.c.bf16 %v574_v24, %v562_v0 }
  0xb4   : > { %1247 = vmatmul.mubr.f32.vlgmr.msra.gmra.mrb[0].mxu0 %v3845_v32  ;;  %v3045_v39 = vpack.c.bf16 %v596_v45, %v584_v42  ;;  %v632_v23 = vand.u32 4294901760, %v3847_v36  ;;  %v644_v47 = vand.u32 4294901760, %v3848_v46  ;;  %1955 = vmatprep.subr.bf16.mxu1 %v2981_v10  ;;  %v592_v25 = vand.u32 4294901760, %v591_v34  ;;  %v3849_v42 = vld [vmem:[#allocation52_spill] sm:$0xff] }
  0xb5   : > { %2145 = vmatpush1.bf16.msra.mxu0 %v2950_v55  ;;  %v604_v38 = vand.u32 4294901760, %v603_v27  ;;  %v615_v61 = vsub.f32 %v3844_v22, %v614_v21  ;;  %v627_v30 = vsub.f32 %v3846_v48, %v626_v15  ;;  %v3053_v16 = vpack.c.bf16 %v580_v20, %v568_v17  ;;  %v3852_v34 = vld [vmem:[#allocation56_spill] sm:$0xff]  ;;  %v3854_v22 = vld [vmem:[#allocation59_spill] sm:$0xff] }
  0xb6   : > { %2147 = vmatprep.subr.bf16.mxu0 %v2965_v8  ;;  %v610_v55 = vand.u32 4294901760, %v609_v3  ;;  %v622_v0 = vand.u32 4294901760, %v621_v31  ;;  %v638_v45 = vand.u32 4294901760, %v3849_v42  ;;  %v3056_v24 = vpack.c.bf16 %v598_v62, %v586_v52  ;;  %v3853_v3 = vld [vmem:[#allocation58_spill] sm:$0xff] }
  0xb7   : > { %v3058_v32 = vpack.c.bf16 %v602_v56, %v590_v29  ;;  %v650_v10 = vand.u32 4294901760, %v3850_v57  ;;  %v656_v8 = vand.u32 4294901760, %v3851_v40  ;;  %1957 = vmatpush1.bf16.msra.mxu1 %v2991_v59  ;;  %v633_v27 = vsub.f32 %v3847_v36, %v632_v23 }
  0xb8   : > { %v645_v17 = vsub.f32 %v3848_v46, %v644_v47  ;;  %v668_v20 = vand.u32 4294901760, %v3852_v34  ;;  %v662_v31 = vand.u32 4294901760, %v3853_v3  ;;  %1959 = vmatprep.subr.bf16.mxu1 %v2993_v11  ;;  %v3070_v56 = vpack.c.bf16 %v604_v38, %v592_v25  ;;  %v3855_v25 = vld [vmem:[#allocation61_spill] sm:$0xff] }
  0xb9   : > { %2149 = vmatpush1.bf16.msra.mxu0 %v2975_v28  ;;  %v3072_v29 = vpack.c.bf16 %v620_v50, %v608_v33  ;;  %v616_v52 = vand.u32 4294901760, %v615_v61  ;;  %v628_v59 = vand.u32 4294901760, %v627_v30  ;;  %v3074_v62 = vpack.c.bf16 %v622_v0, %v610_v55 }
  0xba   : > { %2151 = vmatprep.subr.bf16.mxu0 %v2983_v37  ;;  %v3076_v28 = vpack.c.bf16 %v626_v15, %v614_v21  ;;  %v639_v46 = vsub.f32 %v3849_v42, %v638_v45  ;;  %v651_v36 = vsub.f32 %v3850_v57, %v650_v10  ;;  %v657_v48 = vsub.f32 %v3851_v40, %v656_v8  ;;  %v3856_v15 = vld [vmem:[#allocation62_spill] sm:$0xff]  ;;  %v3858_v42 = vld [vmem:[#allocation65_spill] sm:$0xff] }
  0xbb   : > { %v669_v11 = vsub.f32 %v3852_v34, %v668_v20  ;;  %v674_v37 = vand.u32 4294901760, %v3854_v22  ;;  %v680_v38 = vand.u32 4294901760, %v3855_v25  ;;  %1961 = vmatpush1.bf16.msra.mxu1 %v3009_v44  ;;  %v634_v33 = vand.u32 4294901760, %v633_v27  ;;  %v3857_v34 = vld [vmem:[#allocation64_spill] sm:$0xff] }
  0xbc   : > { %v646_v50 = vand.u32 4294901760, %v645_v17  ;;  %v663_v21 = vsub.f32 %v3853_v3, %v662_v31  ;;  %v692_v61 = vand.u32 4294901760, %v3856_v15  ;;  %1963 = vmatprep.subr.bf16.mxu1 %v3024_v58  ;;  %v3090_v30 = vpack.c.bf16 %v628_v59, %v616_v52  ;;  %v3860_v59 = vld [vmem:[#allocation68_spill] sm:$0xff] }
  0xbd   : > { %2153 = vmatpush1.bf16.msra.mxu0 %v2995_v19  ;;  %v3092_v55 = vpack.c.bf16 %v644_v47, %v632_v23  ;;  %v675_v0 = vsub.f32 %v3854_v22, %v674_v37  ;;  %v686_v44 = vand.u32 4294901760, %v3857_v34  ;;  %v640_v40 = vand.u32 4294901760, %v639_v46 }
  0xbe   : > { %2155 = vmatprep.subr.bf16.mxu0 %v2998_v53  ;;  %v652_v19 = vand.u32 4294901760, %v651_v36  ;;  %v681_v27 = vsub.f32 %v3855_v25, %v680_v38  ;;  %v693_v17 = vsub.f32 %v3856_v15, %v692_v61  ;;  %v3098_v3 = vpack.c.bf16 %v650_v10, %v638_v45  ;;  %v3859_v10 = vld [vmem:[#allocation66_spill] sm:$0xff] }
  0xbf   : > { %v658_v57 = vand.u32 4294901760, %v657_v48  ;;  %v670_v58 = vand.u32 4294901760, %v669_v11  ;;  %v698_v53 = vand.u32 4294901760, %v3858_v42  ;;  %1965 = vmatpush1.bf16.msra.mxu1 %v3029_v41  ;;  %v3103_v47 = vpack.c.bf16 %v646_v50, %v634_v33 }
  0xc0   : > { %v3105_v23 = vpack.c.bf16 %v668_v20, %v656_v8  ;;  %v664_v46 = vand.u32 4294901760, %v663_v21  ;;  %v676_v36 = vand.u32 4294901760, %v675_v0  ;;  %1967 = vmatprep.subr.bf16.mxu1 %v3043_v13  ;;  %v687_v45 = vsub.f32 %v3857_v34, %v686_v44  ;;  %v3861_v13 = vld [vmem:[#allocation72_spill] sm:$0xff] }
  0xc1   : > { %2157 = vmatpush1.bf16.msra.mxu0 %v3012_v43  ;;  %v699_v48 = vsub.f32 %v3858_v42, %v698_v53  ;;  %v704_v52 = vand.u32 4294901760, %v3859_v10  ;;  %v716_v41 = vand.u32 4294901760, %v3860_v59  ;;  %v3113_v11 = vpack.c.bf16 %v652_v19, %v640_v40  ;;  %v3862_v19 = vld [vmem:[#allocation74_spill] sm:$0xff] }
  0xc2   : > { %2159 = vmatprep.subr.bf16.mxu0 %v3014_v51  ;;  %v682_v43 = vand.u32 4294901760, %v681_v27  ;;  %v694_v33 = vand.u32 4294901760, %v693_v17  ;;  %v710_v8 = vand.u32 4294901760, %v2828_v54  ;;  %v3116_v20 = vpack.c.bf16 %v670_v58, %v658_v57 }
  0xc3   : > { %v3118_v50 = vpack.c.bf16 %v674_v37, %v662_v31  ;;  %v722_v51 = vand.u32 4294901760, %v2830_v1  ;;  %v728_v21 = vand.u32 4294901760, %v3861_v13  ;;  %1969 = vmatpush1.bf16.msra.mxu1 %v3053_v16  ;;  %v3124_v0 = vpack.c.bf16 %v676_v36, %v664_v46 }
  0xc4   : > { %v3126_v40 = vpack.c.bf16 %v692_v61, %v680_v38  ;;  %v740_v27 = vand.u32 4294901760, %v3862_v19  ;;  %v734_v17 = vand.u32 4294901760, %v2842_v18  ;;  %1971 = vmatprep.subr.bf16.mxu1 %v3056_v24  ;;  %v688_v57 = vand.u32 4294901760, %v687_v45  ;;  %v3864_v45 = vld [vmem:[#allocation79_spill] sm:$0xff] }
  0xc5   : > { %2161 = vmatpush1.bf16.msra.mxu0 %v3038_v26  ;;  %v700_v31 = vand.u32 4294901760, %v699_v48  ;;  %v705_v37 = vsub.f32 %v3859_v10, %v704_v52  ;;  %v717_v16 = vsub.f32 %v3860_v59, %v716_v41  ;;  %v3134_v26 = vpack.c.bf16 %v694_v33, %v682_v43 }
  0xc6   : > { %2163 = vmatprep.subr.bf16.mxu0 %v3045_v39  ;;  %v3136_v58 = vpack.c.bf16 %v698_v53, %v686_v44  ;;  %v711_v38 = vsub.f32 %v2828_v54, %v710_v8  ;;  %v723_v61 = vsub.f32 %v2830_v1, %v722_v51  ;;  %v729_v46 = vsub.f32 %v3861_v13, %v728_v21  ;;  %v3863_v39 = vld [vmem:[#allocation77_spill] sm:$0xff]  ;;  %v3865_v53 = vld [vmem:[#allocation80_spill] sm:$0xff]  ;;  %v200_v54 = vld [vmem:[%s2660_s14 + $0x18] sm:$0xff] }
  0xc7   : > { %v741_v24 = vsub.f32 %v3862_v19, %v740_v27  ;;  %v746_v36 = vand.u32 4294901760, %v3863_v39  ;;  %v752_v48 = vand.u32 4294901760, %v3864_v45  ;;  %1973 = vmatpush1.bf16.msra.mxu1 %v3070_v56  ;;  %v3146_v43 = vpack.c.bf16 %v716_v41, %v704_v52 }
  0xc8   : > { %v735_v44 = vsub.f32 %v2842_v18, %v734_v17  ;;  %v764_v33 = vand.u32 4294901760, %v3865_v53  ;;  %v758_v1 = vand.u32 4294901760, %v2856_v12  ;;  %1975 = vmatprep.subr.bf16.mxu1 %v3074_v62  ;;  %v3154_v19 = vpack.c.bf16 %v700_v31, %v688_v57 }
  0xc9   : > { %2165 = vmatpush1.bf16.msra.mxu0 %v3058_v32  ;;  %v706_v13 = vand.u32 4294901760, %v705_v37  ;;  %v718_v59 = vand.u32 4294901760, %v717_v16  ;;  %v747_v32 = vsub.f32 %v3863_v39, %v746_v36  ;;  %v712_v56 = vand.u32 4294901760, %v711_v38  ;;  %v199_v16 = vld [vmem:[%s2660_s14 + $0x10] sm:$0xff] }
  0xca   : > { %2167 = vmatprep.subr.bf16.mxu0 %v3072_v29  ;;  %v724_v52 = vand.u32 4294901760, %v723_v61  ;;  %v753_v41 = vsub.f32 %v3864_v45, %v752_v48  ;;  %v765_v18 = vsub.f32 %v3865_v53, %v764_v33  ;;  %v3159_v10 = vpack.c.bf16 %v722_v51, %v710_v8 }
  0xcb   : > { %v730_v42 = vand.u32 4294901760, %v729_v46  ;;  %v742_v34 = vand.u32 4294901760, %v741_v24  ;;  %v3161_v62 = vand.u32 4294901760, %v200_v54  ;;  %1977 = vmatpush1.bf16.msra.mxu1 %v3090_v30  ;;  %v736_v29 = vand.u32 4294901760, %v735_v44  ;;  %v3867_v24 = vld [vmem:[#allocation84_spill] sm:$0xff] }
  0xcc   : > { %v748_v57 = vand.u32 4294901760, %v747_v32  ;;  %v3166_v31 = vsub.f32 %v2856_v12, %v758_v1  ;;  %v770_v37 = vand.u32 4294901760, %v2858_v5  ;;  %1979 = vmatprep.subr.bf16.mxu1 %v3103_v47  ;;  %v3172_v8 = vpack.c.bf16 %v718_v59, %v706_v13  ;;  %v202_v32 = vld [vmem:[%s2660_s14 + $0x28] sm:$0xff]  ;;  %v3868_v47 = vld [vmem:[#allocation85_spill] sm:$0xff] }
  0xcd   : > { %2169 = vmatpush1.bf16.msra.mxu0 %v3076_v28  ;;  %v3174_v51 = vpack.c.bf16 %v740_v27, %v728_v21  ;;  %v754_v30 = vand.u32 4294901760, %v753_v41  ;;  %v766_v38 = vand.u32 4294901760, %v765_v18  ;;  %v3176_v28 = vpack.c.bf16 %v724_v52, %v712_v56  ;;  %v3873_v41 = vld [vmem:[#allocation88_spill] sm:$0xff] }
  0xce   : > { %2171 = vmatprep.subr.bf16.mxu0 %v3092_v55  ;;  %v3178_v61 = vpack.c.bf16 %v746_v36, %v734_v17  ;;  %v3181_v46 = vsub.f32 %v200_v54, %v3161_v62  ;;  %v776_v44 = vand.u32 4294901760, %v3867_v24  ;;  %v3185_v12 = vpack.c.bf16 %v742_v34, %v730_v42  ;;  %v201_v17 = vld [vmem:[%s2660_s14 + $0x20] sm:$0xff]  ;;  %v3876_v54 = vld [vmem:[#allocation94_spill] sm:$0xff] }
  0xcf   : > { %v3187_v55 = vpack.c.bf16 %v764_v33, %v752_v48  ;;  %v788_v59 = vand.u32 4294901760, %v3868_v47  ;;  %v3190_v13 = vand.u32 4294901760, %v199_v16  ;;  %1981 = vmatpush1.bf16.msra.mxu1 %v3113_v11  ;;  %v3194_v18 = vpack.c.bf16 %v748_v57, %v736_v29  ;;  %v3871_v33 = vld [vmem:[#allocation86_spill] sm:$0xff] }
  0xd0   : > { %3866 = vst [vmem:[#allocation59_spill] sm:$0xff] %v3181_v46  ;;  %v3198_v21 = vsub.f32 %v2858_v5, %v770_v37  ;;  %v415_v42 = vand.u32 4294901760, %v3181_v46  ;;  %1983 = vmatprep.subr.bf16.mxu1 %v3116_v20  ;;  %v3203_v34 = vpack.c.bf16 %v766_v38, %v754_v30  ;;  %v3205_v27 = vpack.c.bf16 %v770_v37, %v758_v1 }
  0xd1   : > { %2173 = vmatpush1.bf16.msra.mxu0 %v3098_v3  ;;  %v3208_v11 = vsub.f32 %v199_v16, %v3190_v13  ;;  %v3210_v3 = vand.u32 4294901760, %v202_v32  ;;  %v3215_v48 = vsub.f32 %v3867_v24, %v776_v44  ;;  %v3724_v20 = vand.u32 4294901760, %v3871_v33  ;;  %v3874_v16 = vld [vmem:[#allocation90_spill] sm:$0xff] }
  0xd2   : > { %2175 = vmatprep.subr.bf16.mxu0 %v3105_v23  ;;  %v416_v36 = vsub.f32 %v3181_v46, %v415_v42  ;;  %1255 = vmatprep.mubr.f32.mxu0 %v415_v42  ;;  %v3726_v23 = vand.u32 4294901760, %v2876_v35  ;;  %v3220_v56 = vsub.f32 %v3868_v47, %v788_v59  ;;  %v3725_v29 = vand.u32 4294901760, %v3873_v41  ;;  %v3880_v46 = vld [vmem:[#allocation98_spill] sm:$0xff] }
  0xd3   : > { %3869 = vst [vmem:[#allocation61_spill] sm:$0xff] %v3208_v11  ;;  %3870 = vst [vmem:[#allocation62_spill] sm:$0xff] %v3210_v3  ;;  %v421_v1 = vand.u32 4294901760, %v3208_v11  ;;  %v3224_v52 = vsub.f32 %v202_v32, %v3210_v3  ;;  %1985 = vmatpush1.bf16.msra.mxu1 %v3124_v0  ;;  %v772_v57 = vand.u32 4294901760, %v3198_v21  ;;  %v3727_v30 = vand.u32 4294901760, %v3874_v16 }
  0xd4   : > { %v417_v37 = vand.u32 4294901760, %v416_v36  ;;  %v3231_v38 = vand.u32 4294901760, %v201_v17  ;;  %1987 = vmatprep.subr.bf16.mxu1 %v3134_v26  ;;  %v3235_v32 = vpack.c.bf16 %v788_v59, %v776_v44  ;;  %v783_v21 = vsub.f32 %v3871_v33, %v3724_v20  ;;  %v204_v44 = vld [vmem:[%s2660_s14 + $0x38] sm:$0xff] }
  0xd5   : > { %3872 = vst [vmem:[#allocation77_spill] sm:$0xff] %v3224_v52  ;;  %2177 = vmatpush1.bf16.msra.mxu0 %v3118_v50  ;;  %v422_v42 = vsub.f32 %v3208_v11, %v421_v1  ;;  %v431_v0 = vand.u32 4294901760, %v3224_v52  ;;  %v795_v36 = vsub.f32 %v2876_v35, %v3726_v23  ;;  %v818_v26 = vand.u32 4294901760, %v2902_v63 }
  0xd6   : > { %3875 = vst [vmem:[#allocation79_spill] sm:$0xff] %v3231_v38  ;;  %2179 = vmatprep.subr.bf16.mxu0 %v3126_v40  ;;  %418 = vmatprep.mubr.f32.mxu1 %v417_v37  ;;  %v801_v40 = vsub.f32 %v3873_v41, %v3725_v29  ;;  %v778_v59 = vand.u32 4294901760, %v3215_v48  ;;  %v3254_v20 = vsub.f32 %v201_v17, %v3231_v38  ;;  %v3878_v23 = vand.u32 4294901760, %v3876_v54 }
  0xd7   : > { %1259 = vmatmul.mubr.f32.gmra.mrb[2].mxu0 %v421_v1  ;;  %v423_v37 = vand.u32 4294901760, %v422_v42  ;;  %v432_v50 = vsub.f32 %v3224_v52, %v431_v0  ;;  %1989 = vmatpush1.bf16.msra.mxu1 %v3154_v19  ;;  %v790_v1 = vand.u32 4294901760, %v3220_v56  ;;  %v813_v29 = vsub.f32 %v3874_v16, %v3727_v30 }
  0xd8   : > { %1267 = vmatprep.mubr.f32.mxu0 %v431_v0  ;;  %3877 = vst [vmem:[#allocation80_spill] sm:$0xff] %v3254_v20  ;;  %v807_v48 = vsub.f32 %v3876_v54, %v3878_v23  ;;  %v819_v42 = vsub.f32 %v2902_v63, %v818_v26  ;;  %v203_v0 = vld [vmem:[%s2660_s14 + $0x30] sm:$0xff]  ;;  %1991 = vmatprep.subr.bf16.mxu1 %v3172_v8  ;;  %v3270_v17 = vand.u32 4294901760, %v204_v44  ;;  %v824_v56 = vand.u32 4294901760, %v2905_v14 }
  0xd9   : > { %2181 = vmatpush1.bf16.msra.mxu0 %v3136_v58  ;;  %v433_v19 = vand.u32 4294901760, %v432_v50  ;;  %v437_v58 = vand.u32 4294901760, %v3254_v20  ;;  %424 = vmatmul.mubr.f32.gmra.mrb[2].mxu1 %v423_v37  ;;  %v784_v30 = vand.u32 4294901760, %v783_v21  ;;  %v796_v52 = vand.u32 4294901760, %v795_v36 }
  0xda   : > { %2183 = vmatprep.subr.bf16.mxu0 %v3146_v43  ;;  %3879 = vst [vmem:[#allocation84_spill] sm:$0xff] %v3270_v17  ;;  %v802_v11 = vand.u32 4294901760, %v801_v40  ;;  %v836_v23 = vand.u32 4294901760, %v3880_v46  ;;  %v3276_v8 = vsub.f32 %v204_v44, %v3270_v17  ;;  %v825_v43 = vsub.f32 %v2905_v14, %v824_v56 }
  0xdb   : > { %434 = vmatprep.mubr.f32.mxu1 %v433_v19  ;;  %v438_v38 = vsub.f32 %v3254_v20, %v437_v58  ;;  %1271 = vmatmul.mubr.f32.gmra.mrb[4].mxu0 %v437_v58  ;;  %v3279_v50 = vand.u32 4294901760, %v203_v0  ;;  %v814_v21 = vand.u32 4294901760, %v813_v29  ;;  %v808_v36 = vand.u32 4294901760, %v807_v48 }
  0xdc   : > { %3881 = vst [vmem:[#allocation85_spill] sm:$0xff] %v3276_v8  ;;  %1993 = vmatpush1.bf16.msra.mxu1 %v3176_v28  ;;  %v820_v40 = vand.u32 4294901760, %v819_v42  ;;  %v837_v37 = vsub.f32 %v3880_v46, %v836_v23  ;;  %v447_v44 = vand.u32 4294901760, %v3276_v8  ;;  %v3738_v20 = vand.u32 4294901760, %v2927_v9 }
  0xdd   : > { %2185 = vmatpush1.bf16.msra.mxu0 %v3159_v10  ;;  %1995 = vmatprep.subr.bf16.mxu1 %v3185_v12  ;;  %v439_v19 = vand.u32 4294901760, %v438_v38  ;;  %v3288_v58 = vsub.f32 %v203_v0, %v3279_v50  ;;  %v3883_v28 = vand.u32 4294901760, %v3166_v31  ;;  %v2002_v29 = vpack.c.bf16 %v790_v1, %v778_v59 }
  0xde   : > { %2187 = vmatprep.subr.bf16.mxu0 %v3174_v51  ;;  %v826_v48 = vand.u32 4294901760, %v825_v43  ;;  %v838_v42 = vand.u32 4294901760, %v837_v37  ;;  %v2004_v17 = vpack.c.bf16 %v796_v52, %v784_v30  ;;  %v3884_v3 = vand.u32 4294901760, %v3871_v33  ;;  %1279 = vmatprep.mubr.f32.mxu0 %v447_v44 }
  0xdf   : > { %3882 = vst [vmem:[#allocation86_spill] sm:$0xff] %v3288_v58  ;;  %v2000_v10 = vpack.c.bf16 %v772_v57, %v3883_v28  ;;  %v3885_v12 = vand.u32 4294901760, %v2876_v35  ;;  %440 = vmatmul.mubr.f32.gmra.mrb[4].mxu1 %v439_v19  ;;  %v448_v38 = vsub.f32 %v3276_v8, %v447_v44  ;;  %v453_v0 = vand.u32 4294901760, %v3288_v58  ;;  %v3891_v44 = vld [vmem:[#allocation34_spill] sm:$0xff]  ;;  %v3892_v28 = vld [vmem:[#allocation35_spill] sm:$0xff]  ;;  %v3916_v8 = vld [vmem:[#allocation76_spill] sm:$0xff] }
  0xe0   : > { %1997 = vmatpush1.bf16.msra.mxu1 %v3194_v18  ;;  %v2006_v31 = vpack.c.bf16 %v814_v21, %v802_v11  ;;  %v3886_v57 = vand.u32 4294901760, %v3873_v41  ;;  %v3887_v52 = vand.u32 4294901760, %v3874_v16  ;;  %v3888_v59 = vand.u32 4294901760, %v3876_v54  ;;  %v3910_v19 = vld [vmem:[#allocation66_spill] sm:$0xff] }
  0xe1   : > { %v2196_v51 = vpack.c.bf16 %v3885_v12, %v3884_v3  ;;  %2189 = vmatpush1.bf16.msra.mxu0 %v3178_v61  ;;  %v842_v3 = vand.u32 4294901760, %v2932_v49  ;;  %1999 = vmatprep.subr.bf16.mxu1 %v3203_v34  ;;  %v2008_v43 = vpack.c.bf16 %v820_v40, %v808_v36  ;;  %v449_v37 = vand.u32 4294901760, %v448_v38  ;;  %v3890_v36 = vld [vmem:[#allocation32_spill] sm:$0xff]  ;;  %v3899_v40 = vld [vmem:[#allocation46_spill] sm:$0xff]  ;;  %v3900_v12 = vld [vmem:[#allocation47_spill] sm:$0xff] }
  0xe2   : > { %v2198_v30 = vpack.c.bf16 %v3887_v52, %v3886_v57  ;;  %v2200_v1 = vpack.c.bf16 %v818_v26, %v3888_v59  ;;  %2191 = vmatprep.subr.bf16.mxu0 %v3187_v55  ;;  %v454_v18 = vsub.f32 %v3288_v58, %v453_v0  ;;  %v831_v61 = vsub.f32 %v2927_v9, %v3738_v20  ;;  %v3889_v55 = vld [vmem:[#allocation91_spill] sm:$0xff]  ;;  %v3898_v59 = vld [vmem:[#allocation44_spill] sm:$0xff]  ;;  %v3919_v57 = vld [vmem:[#allocation14_spill] sm:$0xff] }
  0xe3   : > { %v2010_v11 = vpack.c.bf16 %v838_v42, %v826_v48  ;;  %v2202_v21 = vpack.c.bf16 %v836_v23, %v824_v56  ;;  %1283 = vmatmul.mubr.f32.gmra.mrb[6].mxu0 %v453_v0  ;;  %450 = vmatprep.mubr.f32.mxu1 %v449_v37  ;;  %v3894_v48 = vld [vmem:[#allocation38_spill] sm:$0xff]  ;;  %v843_v23 = vsub.f32 %v2932_v49, %v842_v3  ;;  %v3896_v0 = vld [vmem:[#allocation41_spill] sm:$0xff]  ;;  %v3906_v38 = vld [vmem:[#allocation56_spill] sm:$0xff] }
  0xe4   : > { %v455_v34 = vand.u32 4294901760, %v454_v18  ;;  %1546 = vmatprep.mubr.f32.mxu0 %v3889_v55  ;;  %2001 = vmatpush1.bf16.msra.mxu1 %v2000_v10  ;;  %v832_v18 = vand.u32 4294901760, %v831_v61  ;;  %v3907_v42 = vld [vmem:[#allocation58_spill] sm:$0xff]  ;;  %v3911_v10 = vld [vmem:[#allocation68_spill] sm:$0xff]  ;;  %v3913_v58 = vld [vmem:[#allocation71_spill] sm:$0xff] }
  0xe5   : > { %2193 = vmatpush1.bf16.msra.mxu0 %v3205_v27  ;;  %2003 = vmatprep.subr.bf16.mxu1 %v2002_v29  ;;  %v3912_v56 = vld [vmem:[#allocation70_spill] sm:$0xff]  ;;  %v3914_v20 = vld [vmem:[#allocation72_spill] sm:$0xff]  ;;  %v3920_v61 = vld [vmem:[#allocation15_spill] sm:$0xff] }
  0xe6   : > { %2195 = vmatprep.subr.bf16.mxu0 %v3235_v32  ;;  %456 = vmatmul.mubr.f32.gmra.mrb[6].mxu1 %v455_v34  ;;  %v3915_v27 = vld [vmem:[#allocation74_spill] sm:$0xff]  ;;  %v844_v32 = vand.u32 4294901760, %v843_v23  ;;  %v2014_v37 = vpack.c.bf16 %v3920_v61, %v3919_v57  ;;  %v3924_v23 = vld [vmem:[#allocation19_spill] sm:$0xff]  ;;  %v3930_v57 = vld [vmem:[#allocation13_spill] sm:$0xff] }
  0xe7   : > { %847 = vmatprep.mubr.f32.mxu1 %v3889_v55  ;;  %v3917_v29 = vld [vmem:[#allocation82_spill] sm:$0xff]  ;;  %v3933_v61 = vld [vmem:[#allocation16_spill] sm:$0xff] }
  0xe8   : > { %2005 = vmatpush1.bf16.msra.mxu1 %v2004_v17  ;;  %v2012_v26 = vpack.c.bf16 %v844_v32, %v832_v18  ;;  %v3921_v17 = vld [vmem:[#allocation17_spill] sm:$0xff]  ;;  %v3922_v52 = vld [vmem:[#allocation18_spill] sm:$0xff]  ;;  %v3926_v18 = vld [vmem:[#allocation92_spill] sm:$0xff] }
  0xe9   : > { %2197 = vmatpush1.bf16.msra.mxu0 %v2196_v51  ;;  %2007 = vmatprep.subr.bf16.mxu1 %v2006_v31  ;;  %v3918_v31 = vand.u32 4294901760, %v2927_v9  ;;  %v2016_v34 = vpack.c.bf16 %v3922_v52, %v3921_v17  ;;  %v3923_v51 = vld [vmem:[#allocation11_spill] sm:$0xff]  ;;  %v3931_v52 = vld [vmem:[#allocation24_spill] sm:$0xff]  ;;  %v3935_v17 = vld [vmem:[#allocation29_spill] sm:$0xff] }
  0xea   : > { %2199 = vmatprep.subr.bf16.mxu0 %v2198_v30 }
  0xeb   : > { %v2204_v30 = vpack.c.bf16 %v842_v3, %v3918_v31  ;;  %v3927_v3 = vld [vmem:[#allocation12_spill] sm:$0xff]  ;;  %v3937_v31 = vld [vmem:[#allocation62_spill] sm:$0xff] }
  0xec   : > { %2009 = vmatpush1.bf16.msra.mxu1 %v2008_v43  ;;  %v3925_v43 = vld [vmem:[#allocation21_spill] sm:$0xff] }
  0xed   : > { %2201 = vmatpush1.bf16.msra.mxu0 %v2200_v1  ;;  %2011 = vmatprep.subr.bf16.mxu1 %v2010_v11  ;;  %v2018_v1 = vpack.c.bf16 %v3925_v43, %v3924_v23  ;;  %v3928_v11 = vld [vmem:[#allocation22_spill] sm:$0xff]  ;;  %v3936_v23 = vld [vmem:[#allocation20_spill] sm:$0xff] }
  0xee   : > { %2203 = vmatprep.subr.bf16.mxu0 %v2202_v21  ;;  %v3929_v21 = vld [vmem:[#allocation23_spill] sm:$0xff]  ;;  %v3939_v43 = vld [vmem:[#allocation26_spill] sm:$0xff] }
  0xf0   : > { %2013 = vmatpush1.bf16.msra.mxu1 %v2012_v26  ;;  %v2020_v26 = vpack.c.bf16 %v3929_v21, %v3928_v11  ;;  %v3942_v11 = vld [vmem:[#allocation84_spill] sm:$0xff]  ;;  %v3943_v21 = vpack.c.bf16 %v2728_v6, %v2724_v4  ;;  %v3950_v4 = vld [vmem:[#allocation37_spill] sm:$0xff] }
  0xf1   : > { %2205 = vmatpush1.bf16.msra.mxu0 %v2204_v30  ;;  %2015 = vmatprep.subr.bf16.mxu1 %v2014_v37  ;;  %v3932_v37 = vld [vmem:[#allocation25_spill] sm:$0xff]  ;;  %v3938_v30 = vld [vmem:[#allocation79_spill] sm:$0xff]  ;;  %v3951_v6 = vpack.c.bf16 %v3894_v48, %v3950_v4 }
  0xf2   : > { %2207 = vmatprep.subr.bf16.mxu0 %v3923_v51  ;;  %v2022_v32 = vpack.c.bf16 %v3932_v37, %v3931_v52  ;;  %v3948_v52 = vpack.c.bf16 %v3892_v28, %v3891_v44  ;;  %v3949_v37 = vld [vmem:[#allocation33_spill] sm:$0xff]  ;;  %v3958_v44 = vld [vmem:[#allocation42_spill] sm:$0xff]  ;;  %v3959_v28 = vpack.c.bf16 %v3900_v12, %v3899_v40  ;;  %v3972_v12 = vpack.c.bf16 %v3854_v22, %v3907_v42  ;;  %v3981_v22 = vld [vmem:[#allocation67_spill] sm:$0xff] }
  0xf3   : > { %849 = vmatmul.mubr.f32.vlgmr.msra.gmra.mrb[0].mxu1 %v3926_v18  ;;  %v3960_v48 = vld [vmem:[#allocation45_spill] sm:$0xff]  ;;  %v3971_v40 = vld [vmem:[#allocation54_spill] sm:$0xff]  ;;  %v3982_v42 = vpack.c.bf16 %v3913_v58, %v3912_v56  ;;  %v3990_v56 = vpack.c.bf16 %v2858_v5, %v3917_v29  ;;  %v3998_v29 = vpack.c.bf16 %v2902_v63, %v3876_v54  ;;  %v4005_v63 = vld [vmem:[#allocation59_spill] sm:$0xff] }
  0xf4   : > { %1548 = vmatmul.mubr.f32.vlgmr.msra.gmra.mrb[0].mxu0 %v3926_v18  ;;  %2017 = vmatpush1.bf16.msra.mxu1 %v2016_v34  ;;  %v3934_v34 = vld [vmem:[#allocation27_spill] sm:$0xff]  ;;  %v3989_v58 = vld [vmem:[#allocation78_spill] sm:$0xff]  ;;  %v3997_v5 = vld [vmem:[#allocation89_spill] sm:$0xff] }
  0xf5   : > { %2209 = vmatpush1.bf16.msra.mxu0 %v3927_v3  ;;  %2019 = vmatprep.subr.bf16.mxu1 %v2018_v1  ;;  %v2024_v51 = vpack.c.bf16 %v3935_v17, %v3934_v34  ;;  %v3940_v1 = vpack.c.bf16 %v2720_v2, %v2718_v60  ;;  %v3941_v3 = vld [vmem:[#allocation28_spill] sm:$0xff]  ;;  %v3945_v60 = vpack.c.bf16 %v3890_v36, %v2730_v7  ;;  %v3946_v2 = vld [vmem:[#allocation31_spill] sm:$0xff]  ;;  %v3961_v17 = vld [vmem:[#allocation50_spill] sm:$0xff] }
  0xf6   : > { %2211 = vmatprep.subr.bf16.mxu0 %v3930_v57  ;;  %855 = vmatprep.mubr.f32.mxu1 %v3161_v62  ;;  %v3947_v57 = vld [vmem:[#allocation95_spill] sm:$0xff]  ;;  %v3953_v7 = vld [vmem:[#allocation40_spill] sm:$0xff]  ;;  %v4006_v54 = vld [vmem:[#allocation61_spill] sm:$0xff] }
  0xf7   : > { %1554 = vmatprep.mubr.f32.mxu0 %v3161_v62  ;;  %857 = vmatmul.mubr.f32.gmra.mrb[2].mxu1 %v3190_v13  ;;  %v3954_v36 = vpack.c.bf16 %v3896_v0, %v3953_v7  ;;  %v3964_v0 = vld [vmem:[#allocation49_spill] sm:$0xff]  ;;  %v3986_v7 = vpack.c.bf16 %v3863_v39, %v3916_v8  ;;  %v3993_v39 = vld [vmem:[#allocation83_spill] sm:$0xff]  ;;  %v3994_v8 = vpack.c.bf16 %v2876_v35, %v3871_v33  ;;  %v4001_v35 = vld [vmem:[#allocation96_spill] sm:$0xff] }
  0xf8   : > { %1556 = vmatmul.mubr.f32.gmra.mrb[2].mxu0 %v3190_v13  ;;  %2021 = vmatpush1.bf16.msra.mxu1 %v2020_v26  ;;  %v3944_v26 = vld [vmem:[#allocation30_spill] sm:$0xff]  ;;  %v4002_v33 = vpack.c.bf16 %v2932_v49, %v2927_v9  ;;  %v4008_v49 = vld [vmem:[#allocation80_spill] sm:$0xff]  ;;  %v4009_v9 = vld [vmem:[#allocation85_spill] sm:$0xff] }
  0xf9   : > { %2213 = vmatpush1.bf16.msra.mxu0 %v3933_v61  ;;  %2023 = vmatprep.subr.bf16.mxu1 %v2022_v32  ;;  %v3952_v32 = vld [vmem:[#allocation36_spill] sm:$0xff]  ;;  %v3955_v61 = vld [vmem:[#allocation39_spill] sm:$0xff] }
  0xfa   : > { %2215 = vmatprep.subr.bf16.mxu0 %v3936_v23  ;;  %863 = vmatprep.mubr.f32.mxu1 %v3937_v31 }
  0xfb   : > { %1562 = vmatprep.mubr.f32.mxu0 %v3937_v31  ;;  %865 = vmatmul.mubr.f32.gmra.mrb[4].mxu1 %v3938_v30 }
  0xfc   : > { %1564 = vmatmul.mubr.f32.gmra.mrb[4].mxu0 %v3938_v30  ;;  %2025 = vmatpush1.bf16.msra.mxu1 %v2024_v51  ;;  %v3962_v51 = vld [vmem:[#allocation48_spill] sm:$0xff] }
  0xfd   : > { %2217 = vmatpush1.bf16.msra.mxu0 %v3939_v43  ;;  %2027 = vmatprep.subr.bf16.mxu1 %v3940_v1  ;;  %v3963_v23 = vpack.c.bf16 %v3961_v17, %v3962_v51  ;;  %v3965_v43 = vld [vmem:[#allocation53_spill] sm:$0xff]  ;;  %v3966_v1 = vld [vmem:[#allocation52_spill] sm:$0xff] }
  0xfe   : > { %2219 = vmatprep.subr.bf16.mxu0 %v3941_v3  ;;  %871 = vmatprep.mubr.f32.mxu1 %v3942_v11  ;;  %v3967_v3 = vpack.c.bf16 %v3965_v43, %v3966_v1 }
  0xff   : > { %1570 = vmatprep.mubr.f32.mxu0 %v3942_v11  ;;  %873 = vmatmul.mubr.f32.gmra.mrb[6].mxu1 %v3279_v50 }
 0x100   : > { %1572 = vmatmul.mubr.f32.gmra.mrb[6].mxu0 %v3279_v50  ;;  %2029 = vmatpush1.bf16.msra.mxu1 %v3943_v21  ;;  %v3969_v21 = vld [vmem:[#allocation55_spill] sm:$0xff] }
 0x101   : > { %2221 = vmatpush1.bf16.msra.mxu0 %v3944_v26  ;;  %2031 = vmatprep.subr.bf16.mxu1 %v3945_v60  ;;  %v3970_v26 = vpack.c.bf16 %v3906_v38, %v3969_v21  ;;  %v3973_v60 = vld [vmem:[#allocation57_spill] sm:$0xff]  ;;  %v3979_v38 = vld [vmem:[#allocation63_spill] sm:$0xff] }
 0x102   : > { %2223 = vmatprep.subr.bf16.mxu0 %v3946_v2  ;;  %1073 = vmatprep.mubr.f32.mxu1 %v3947_v57  ;;  %v3974_v2 = vpack.c.bf16 %v3856_v15, %v3855_v25  ;;  %v3975_v57 = vld [vmem:[#allocation60_spill] sm:$0xff]  ;;  %v3983_v25 = vld [vmem:[#allocation69_spill] sm:$0xff]  ;;  %v3984_v15 = vpack.c.bf16 %v3915_v27, %v3914_v20  ;;  %v3992_v27 = vpack.c.bf16 %v3868_v47, %v3867_v24 }
 0x103   : > { %1707 = vmatprep.mubr.f32.mxu0 %v3889_v55  ;;  %v3956_v55 = vld [vmem:[#allocation43_spill] sm:$0xff]  ;;  %v3991_v20 = vld [vmem:[#allocation81_spill] sm:$0xff]  ;;  %v4000_v47 = vpack.c.bf16 %v3880_v46, %v2905_v14  ;;  %v4010_v46 = vld [vmem:[#allocation86_spill] sm:$0xff] }
 0x104   : > { %2033 = vmatpush1.bf16.msra.mxu1 %v3948_v52  ;;  %v3957_v34 = vpack.c.bf16 %v3898_v59, %v3956_v55  ;;  %v3968_v59 = vld [vmem:[#allocation51_spill] sm:$0xff]  ;;  %v3976_v52 = vld [vmem:[#allocation65_spill] sm:$0xff] }
 0x105   : > { %2225 = vmatpush1.bf16.msra.mxu0 %v3949_v37  ;;  %2035 = vmatprep.subr.bf16.mxu1 %v3951_v6  ;;  %v3977_v37 = vld [vmem:[#allocation64_spill] sm:$0xff]  ;;  %v3980_v6 = vpack.c.bf16 %v3911_v10, %v3910_v19  ;;  %v3987_v19 = vld [vmem:[#allocation75_spill] sm:$0xff]  ;;  %v3988_v10 = vpack.c.bf16 %v3865_v53, %v3864_v45  ;;  %v3996_v53 = vpack.c.bf16 %v3874_v16, %v3873_v41  ;;  %v3999_v24 = vld [vmem:[#allocation93_spill] sm:$0xff] }
 0x106   : > { %2227 = vmatprep.subr.bf16.mxu0 %v3952_v32  ;;  %v3978_v4 = vpack.c.bf16 %v3976_v52, %v3977_v37  ;;  %v3985_v32 = vld [vmem:[#allocation73_spill] sm:$0xff]  ;;  %v3995_v45 = vld [vmem:[#allocation87_spill] sm:$0xff] }
 0x107   : > { %v4003_v41 = vld [vmem:[#allocation99_spill] sm:$0xff]  ;;  %v4004_v16 = vld [vmem:[#allocation97_spill] sm:$0xff] }
 0x108   : > { %2037 = vmatpush1.bf16.msra.mxu1 %v3954_v36  ;;  %v4007_v14 = vld [vmem:[#allocation77_spill] sm:$0xff] }
 0x109   : > { %2229 = vmatpush1.bf16.msra.mxu0 %v3955_v61  ;;  %2039 = vmatprep.subr.bf16.mxu1 %v3957_v34 }
 0x10a   : > { %2231 = vmatprep.subr.bf16.mxu0 %v3958_v44 }
 0x10c   : > { %2041 = vmatpush1.bf16.msra.mxu1 %v3959_v28 }
 0x10d   : > { %2233 = vmatpush1.bf16.msra.mxu0 %v3960_v48  ;;  %2043 = vmatprep.subr.bf16.mxu1 %v3963_v23 }
 0x10e   : > { %2235 = vmatprep.subr.bf16.mxu0 %v3964_v0 }
 0x110   : > { %2045 = vmatpush1.bf16.msra.mxu1 %v3967_v3 }
 0x111   : > { %2237 = vmatpush1.bf16.msra.mxu0 %v3968_v59  ;;  %2047 = vmatprep.subr.bf16.mxu1 %v3970_v26 }
 0x112   : > { %2239 = vmatprep.subr.bf16.mxu0 %v3971_v40 }
 0x114   : > { %2049 = vmatpush1.bf16.msra.mxu1 %v3972_v12 }
 0x115   : > { %2241 = vmatpush1.bf16.msra.mxu0 %v3973_v60  ;;  %2051 = vmatprep.subr.bf16.mxu1 %v3974_v2 }
 0x116   : > { %2243 = vmatprep.subr.bf16.mxu0 %v3975_v57 }
 0x118   : > { %2053 = vmatpush1.bf16.msra.mxu1 %v3978_v4 }
 0x119   : > { %2245 = vmatpush1.bf16.msra.mxu0 %v3979_v38  ;;  %2055 = vmatprep.subr.bf16.mxu1 %v3980_v6 }
 0x11a   : > { %2247 = vmatprep.subr.bf16.mxu0 %v3981_v22 }
 0x11c   : > { %2057 = vmatpush1.bf16.msra.mxu1 %v3982_v42 }
 0x11d   : > { %2249 = vmatpush1.bf16.msra.mxu0 %v3983_v25  ;;  %2059 = vmatprep.subr.bf16.mxu1 %v3984_v15 }
 0x11e   : > { %2251 = vmatprep.subr.bf16.mxu0 %v3985_v32 }
 0x120   : > { %2061 = vmatpush1.bf16.msra.mxu1 %v3986_v7 }
 0x121   : > { %2253 = vmatpush1.bf16.msra.mxu0 %v3987_v19  ;;  %2063 = vmatprep.subr.bf16.mxu1 %v3988_v10 }
 0x122   : > { %2255 = vmatprep.subr.bf16.mxu0 %v3989_v58 }
 0x124   : > { %2065 = vmatpush1.bf16.msra.mxu1 %v3990_v56 }
 0x125   : > { %2257 = vmatpush1.bf16.msra.mxu0 %v3991_v20  ;;  %2067 = vmatprep.subr.bf16.mxu1 %v3992_v27 }
 0x126   : > { %2259 = vmatprep.subr.bf16.mxu0 %v3993_v39 }
 0x128   : > { %2069 = vmatpush1.bf16.msra.mxu1 %v3994_v8 }
 0x129   : > { %2261 = vmatpush1.bf16.msra.mxu0 %v3995_v45  ;;  %2071 = vmatprep.subr.bf16.mxu1 %v3996_v53 }
 0x12a   : > { %2263 = vmatprep.subr.bf16.mxu0 %v3997_v5 }
 0x12c   : > { %2073 = vmatpush1.bf16.msra.mxu1 %v3998_v29 }
 0x12d   : > { %2265 = vmatpush1.bf16.msra.mxu0 %v3999_v24  ;;  %2075 = vmatprep.subr.bf16.mxu1 %v4000_v47 }
 0x12e   : > { %2267 = vmatprep.subr.bf16.mxu0 %v4001_v35 }
 0x130   : > { %2077 = vmatpush1.bf16.msra.mxu1 %v4002_v33 }
 0x131   : > { %2269 = vmatpush1.bf16.msra.mxu0 %v4003_v41 }
 0x133   : > { %1076 = vmatmul.mubr.f32.vlgmr.msra.gmra.mrb[0].mxu1 %v4004_v16 }
 0x134   : > { %1709 = vmatmul.mubr.f32.vlgmr.msra.gmra.mrb[0].mxu0 %v3926_v18  ;;  %1083 = vmatprep.mubr.f32.mxu1 %v4005_v63 }
 0x135   : > { %1715 = vmatprep.mubr.f32.mxu0 %v3161_v62 }
 0x137   : > { %1086 = vmatmul.mubr.f32.gmra.mrb[2].mxu1 %v4006_v54 }
 0x138   : > { %1717 = vmatmul.mubr.f32.gmra.mrb[2].mxu0 %v3190_v13  ;;  %1093 = vmatprep.mubr.f32.mxu1 %v4007_v14 }
 0x139   : > { %1723 = vmatprep.mubr.f32.mxu0 %v3937_v31 }
 0x13b   : > { %1096 = vmatmul.mubr.f32.gmra.mrb[4].mxu1 %v4008_v49 }
 0x13c   : > { %1725 = vmatmul.mubr.f32.gmra.mrb[4].mxu0 %v3938_v30  ;;  %1103 = vmatprep.mubr.f32.mxu1 %v4009_v9 }
 0x13d   : > { %1731 = vmatprep.mubr.f32.mxu0 %v3942_v11 }
 0x13f   : > { %1106 = vmatmul.mubr.f32.gmra.mrb[6].mxu1 %v4010_v46 }
 0x140   : > { %1733 = vmatmul.mubr.f32.gmra.mrb[6].mxu0 %v3279_v50 }
 0x206   : > { %v1077_v62 = vpop.f32.mrb[0].mxu1 }
 0x207   : > { %v1710_v18 = vpop.f32.mrb[0].mxu0  ;;  %v1079_v13 = vpop.f32.mrb[1].mxu1 }
 0x208   : > { %v2270_v36 = vadd.f32 %v1710_v18, %v1077_v62  ;;  %v1712_v61 = vpop.f32.mrb[1].mxu0 }
 0x209   : > { %v2271_v55 = vadd.f32 %v1712_v61, %v1079_v13 }
 0x20a   : > { %1739 = vst [vmem:[%s3527_s20] sm:$0xff] %v2270_v36  ;;  %v1087_v31 = vpop.f32.mrb[2].mxu1 }
 0x20b   : > { %1740 = vst [vmem:[%s3527_s20 + $0x8] sm:$0xff] %v2271_v55  ;;  %v1718_v30 = vpop.f32.mrb[2].mxu0  ;;  %v1089_v11 = vpop.f32.mrb[3].mxu1 }
 0x20c   : > { %v2272_v50 = vadd.f32 %v1718_v30, %v1087_v31  ;;  %v1720_v34 = vpop.f32.mrb[3].mxu0 }
 0x20d   : > { %v2273_v44 = vadd.f32 %v1720_v34, %v1089_v11 }
 0x20e   : > { %1741 = vst [vmem:[%s3527_s20 + $0x10] sm:$0xff] %v2272_v50  ;;  %v1097_v28 = vpop.f32.mrb[4].mxu1 }
 0x20f   : > { %1742 = vst [vmem:[%s3527_s20 + $0x18] sm:$0xff] %v2273_v44  ;;  %v1726_v48 = vpop.f32.mrb[4].mxu0  ;;  %v1099_v51 = vpop.f32.mrb[5].mxu1 }
 0x210   : > { %v2274_v17 = vadd.f32 %v1726_v48, %v1097_v28  ;;  %v1728_v23 = vpop.f32.mrb[5].mxu0 }
 0x211   : > { %v2275_v0 = vadd.f32 %v1728_v23, %v1099_v51  ;;  %1754 = sbr.rel (!%p4011_p8) target bundleno = 564 (0x234), region = 40 }
 0x212   : > { %1743 = vst [vmem:[%s3527_s20 + $0x20] sm:$0xff] %v2274_v17  ;;  %v1107_v43 = vpop.f32.mrb[6].mxu1 }
 0x213   : > { %1744 = vst [vmem:[%s3527_s20 + $0x28] sm:$0xff] %v2275_v0  ;;  %v1734_v1 = vpop.f32.mrb[6].mxu0  ;;  %v1109_v59 = vpop.f32.mrb[7].mxu1 }
 0x214   : > { %v2276_v3 = vadd.f32 %v1734_v1, %v1107_v43  ;;  %v1736_v21 = vpop.f32.mrb[7].mxu0 }
 0x215   : > { %v2277_v26 = vadd.f32 %v1736_v21, %v1109_v59 }
 0x216   : > { %1745 = vst [vmem:[%s3527_s20 + $0x30] sm:$0xff] %v2276_v3 }
 0x217   : > { %1746 = vst [vmem:[%s3527_s20 + $0x38] sm:$0xff] %v2277_v26 }
 0x218   : > { %s4020_s30 = smov (!%p1757_p9, %s1756_s30), 4 }
 0x219   : > { %s3541_s5 = sshll.u32 %s4020_s30, 8 }
 0x21a   : > { %s1762_s6 = ssub.s32 1024, %s3541_s5 }
 0x21b   : > { %1763 = vsyncadd %s1748_s23, %s1762_s6  ;;  %p1873_p10 = scmp.ne.s32.totalorder %s3541_s5, 0  ;;  %s1885_s21 = sshll.u32 %s2539_s13, 10 }
 0x21c   : > { %s3551_s24 = scalar_lea.hbm %s3601_s2, %s1885_s21  ;;  %s1769_s27 = sshll.u32 %s3527_s20, 4  ;;  %s3554_s27 = int_to_ptr.vmem [resolvable:$true] %s1769_s27 }
 0x21d   : > { %s2422_s28 = scalar_lea.vmem %s3554_s27, %s3541_s5  ;;  %s2500_s26 = smov [#allocation7]  }
 0x21e   : > { %p2423_p1 = scmp.ne.s32.totalorder %s3554_s27, %s2422_s28  ;;  %s2426_s25 = sshll.u32 %s2500_s26, 4  ;;  %s2427_s25 = int_to_ptr.vmem [resolvable:$false] %s2426_s25 }
 0x21f   : > { %s2428_s13 = scalar_lea.vmem %s2427_s25, 2048  ;;  %p2429_p4 = scmp.lt.s32.totalorder %s3554_s27, %s2427_s25 }
 0x220   : > { %p2424_p0 = pnand %p2423_p1, %p1873_p10  ;;  %p2430_p6 = scmp.lt.s32.totalorder %s2428_s13, %s2422_s28 }
 0x222   : > { %p2425_p7 = pneg %p2424_p0  ;;  %p2431_p11 = por %p2430_p6, %p2429_p4 }
 0x224   : > { %p2432_p13 = pnand %p2431_p11, %p2425_p7 }
 0x226   : > { %2435 = shalt.err (!%p2432_p13)
}
 0x227   : > { %s2436_s19 = scalar_lea.hbm %s3551_s24, %s3541_s5  ;;  %s2440_s8 = scalar_lea.hbm %s3601_s2, 2560 }
 0x228   : > { %p2437_p12 = scmp.ne.s32.totalorder %s3551_s24, %s2436_s19  ;;  %p2441_p3 = scmp.lt.u32.totalorder %s3551_s24, %s3601_s2 }
 0x229   : > { %p2442_p8 = scmp.lt.u32.totalorder %s2440_s8, %s2436_s19  ;;  %p2444_p1 = scmp.lt.u32.totalorder %s2436_s19, %s3551_s24 }
 0x22a   : > { %p2438_p2 = pnand %p2437_p12, %p1873_p10 }
 0x22b   : > { %p2443_p9 = por %p2442_p8, %p2441_p3 }
 0x22c   : > { %p2439_p5 = pneg %p2438_p2 }
 0x22d   : > { %p2445_p0 = por %p2444_p1, %p2443_p9 }
 0x22f   : > { %p2446_p7 = pnand %p2445_p0, %p2439_p5 }
 0x231   : > { %2449 = shalt.err (!%p2446_p7)
}
 0x232   : > { %s2501_s29 = smov 256   ;;  %s2502_s30 = smov 16  }
 0x233   : > { %1775 = dma.vmem_to_hbm [thread:$0]  (%p1873_p10), %s3554_s27, %s3541_s5, %s3551_s24, %s1748_s23, %s2501_s29, %s2501_s29, %s2502_s30  }
 0x234 PF: > { %p2326_p4 = scmp.ge.s32.totalorder %s2492_s12, 2  ;;  %s1784_s6 = sand.u32 1, %s2480_s9  }
 0x235   : > { %p4012_p6 = scmp.ne.s32.totalorder %s3744_s22, 0  ;;  %s1785_s21 = scalar_lea.sflag [#allocation4], %s1784_s6 }
 0x237   : > { %p2321_p11 = pnand %p2326_p4, %p4012_p6 }
 0x239   : > { %2475 = dma.done.wait (!%p2321_p11), %s1785_s21, 1024  }
 0x23a   : > { %2477 = vsyncadd (!%p2321_p11), %s1785_s21, 4294966272  ;;  %p16_p13 = scmp.ge.s32.totalorder %s2543_s15, 5   ;;  %s4013_s9 = smov %s2484_s10 }
 0x23b   : > { %s4014_s10 = smov %s2488_s11  ;;  %s4015_s11 = smov %s2555_s18 }
 0x23c   : > { %s4016_s12 = smov %s2543_s15  ;;  %18 = sbr.rel (!%p16_p13) target bundleno = 6 (0x6), region = 77 }
 0x243   :  { %1790 = vsyncpa [#allocation3], 1 }
 0x244   :  { %1792 = vsyncpa [#allocation3 + $0x1], 1 }
 0x245   :  { %1793 = vsyncpa [#allocation6], 1 }
 0x246   :  { %1794 = vsyncpa [#allocation4], 1 }
 0x247   :  { %1796 = vsyncpa [#allocation4 + $0x1], 1 }

</bundles_post_ra>
